<compile_context>
chip_gen: v7x
topology: tpu7x:2x2x1
jax: 0.10.0
libtpu: 0.0.40
codegen_flags: <defaults>
</compile_context>

<pallas_src>
import functools

import numpy as np
import jax
import jax.numpy as jnp
from jax import lax
from jax.experimental import pallas as pl
from jax.experimental.pallas import tpu as pltpu


def _round_up(x: int, m: int) -> int:
    return ((x + m - 1) // m) * m


def _assignment_kernel(cost_ref, r2c_ref, c2r_ref, *,
                       threshold: float, n_iters: int,
                       use_while: bool, unroll):
    """Threshold + greedy LAP on a block of Bt (padded) cost matrices.

    cost_ref : (Bt, Np, Mp) f32   input block (padding pre-filled with +inf)
    r2c_ref  : (Bt, 1, NP)  i32   matched column per row (-1 = unmatched)
    c2r_ref  : (Bt, 1, MP)  i32   matched row per column (-1 = unmatched)
    """
    Bt, Np, Mp = cost_ref.shape
    NP = r2c_ref.shape[-1]
    MP = c2r_ref.shape[-1]
    INF = jnp.float32(jnp.inf)

    # forward(): cost = where(cost < threshold, cost, inf).  Padding stays +inf.
    # Keep everything in f32 so tie-breaking (exact-equality compares below)
    # matches the host reference.
    cost = cost_ref[...].astype(jnp.float32)
    w0 = jnp.where(cost < jnp.float32(threshold), cost, INF)

    # Loop-invariant iotas (hoisted once; no (N, M) int32 index tensors).
    row_iota = lax.broadcasted_iota(jnp.int32, (1, Np, 1), 1)
    col_iota = lax.broadcasted_iota(jnp.int32, (1, 1, Mp), 2)
    lane_n = lax.broadcasted_iota(jnp.int32, (1, 1, NP), 2)
    lane_m = lax.broadcasted_iota(jnp.int32, (1, 1, MP), 2)

    r2c0 = jnp.full((Bt, 1, NP), -1, jnp.int32)
    c2r0 = jnp.full((Bt, 1, MP), -1, jnp.int32)

    def step(w, r2c, c2r):
        # One pass over w: per-row min and (fused) per-row argmin column.
        rowmin = jnp.min(w, axis=2, keepdims=True)                     # (Bt, Np, 1)
        argc = jnp.min(jnp.where(w <= rowmin, col_iota, jnp.int32(Mp)),
                       axis=2, keepdims=True)                          # (Bt, Np, 1)
        mn = jnp.min(rowmin, axis=1, keepdims=True)                    # (Bt, 1, 1)
        valid = mn < INF                                               # finite <=> below threshold
        # First row achieving the global min (row-major tie-break), then its
        # first minimizing column -- no dynamic-offset VMEM read needed.
        r = jnp.min(jnp.where(rowmin <= mn, row_iota, jnp.int32(Np)),
                    axis=1, keepdims=True)                             # (Bt, 1, 1)
        c = jnp.min(jnp.where(row_iota == r, argc, jnp.int32(Mp)),
                    axis=1, keepdims=True)                             # (Bt, 1, 1)
        # Record the match (gated on validity).
        r2c = jnp.where((lane_n == r) & valid, c, r2c)
        c2r = jnp.where((lane_m == c) & valid, r, c2r)
        # Kill row r and column c via broadcast compares (stays in vregs).
        kill = ((row_iota == r) | (col_iota == c)) & valid
        w = jnp.where(kill, INF, w)
        not_done = (jnp.min(mn) < INF).astype(jnp.int32)
        return w, r2c, c2r, not_done

    if use_while:
        # Large-matrix path: early-exit as soon as nothing below the threshold
        # remains (the body cost dwarfs loop overhead, so losing unroll is
        # irrelevant).
        def cond(state):
            i, nd = state[0], state[1]
            return jnp.logical_and(i < n_iters, nd > 0)

        def wbody(state):
            i, _, w, r2c, c2r = state
            w, r2c, c2r, nd = step(w, r2c, c2r)
            return i + jnp.int32(1), nd, w, r2c, c2r

        _, _, _, r2c, c2r = lax.while_loop(
            cond, wbody,
            (jnp.int32(0), jnp.int32(1), w0, r2c0, c2r0))
    else:
        # Small-matrix path: everything lives in vregs; unrolled serial loop.
        def fbody(i, carry):
            del i
            w, r2c, c2r = carry
            w, r2c, c2r, _ = step(w, r2c, c2r)
            return w, r2c, c2r

        _, r2c, c2r = lax.fori_loop(0, n_iters, fbody, (w0, r2c0, c2r0),
                                    unroll=unroll)

    r2c_ref[...] = r2c
    c2r_ref[...] = c2r


def assignment_solve_batched(cost, threshold: float = float("inf")):
    """Greedy LAP on a batch of cost matrices.

    cost: (B, N, M).  Returns (r2c (B, N) int32, c2r (B, M) int32); -1 marks
    unmatched rows / columns.
    """
    cost = jnp.asarray(cost, jnp.float32)
    B, N, M = cost.shape
    Np = _round_up(max(N, 8), 8)          # sublane-aligned
    Mp = _round_up(max(M, 128), 128)      # lane-aligned
    NP = _round_up(max(N, 128), 128)      # lane-dense int32 outputs
    MP = _round_up(max(M, 128), 128)
    n_iters = min(N, M)

    mat_bytes = Np * Mp * 4
    small = mat_bytes <= 48 * 1024        # working matrix fits comfortably in vregs

    if small:
        # Solve several matrices per grid step; keep the carried working set at
        # roughly <= 8 vregs so nothing spills.
        Bt = max(1, min(B, (32 * 1024) // mat_bytes, 16))
        use_while = False
        unroll = True if n_iters <= 32 else 4
    else:
        # Large matrices: one per step, early-exit while_loop.
        # TODO(synk): for very large matrices a VMEM-resident variant with
        #             narrow kill stores (row + lane-masked column) and
        #             pipeline_mode=pl.Buffered(1) would cut the footprint to
        #             ~2x the matrix on v7x.
        Bt = 1
        use_while = True
        unroll = 1

    Bp = _round_up(B, Bt)
    cost_p = jnp.pad(cost, ((0, Bp - B), (0, Np - N), (0, Mp - M)),
                     constant_values=jnp.inf)

    kernel = functools.partial(_assignment_kernel,
                               threshold=float(threshold),
                               n_iters=n_iters,
                               use_while=use_while,
                               unroll=unroll)

    # VMEM budget from the real buffer count: double-buffered input block +
    # double-buffered outputs + (large path only) the loop-carried working
    # matrix, plus slack for compiler temporaries.  Cap from the chip's actual
    # VMEM with headroom instead of a hard 64 MiB.
    needed = (2 * Bt * mat_bytes
              + 2 * Bt * (NP + MP) * 4
              + (0 if small else mat_bytes)
              + (4 << 20))
    try:
        cap = int(pltpu.get_tpu_info().vmem_capacity_bytes) - (12 << 20)
    except Exception:
        cap = 48 << 20
    vmem_limit = int(min(max(needed, 16 << 20), max(cap, 32 << 20)))

    r2c, c2r = pl.pallas_call(
        kernel,
        out_shape=(jax.ShapeDtypeStruct((Bp, 1, NP), jnp.int32),
                   jax.ShapeDtypeStruct((Bp, 1, MP), jnp.int32)),
        grid_spec=pltpu.PrefetchScalarGridSpec(
            num_scalar_prefetch=0,
            grid=(Bp // Bt,),
            in_specs=[pl.BlockSpec((Bt, Np, Mp), lambda g: (g, 0, 0))],
            out_specs=(pl.BlockSpec((Bt, 1, NP), lambda g: (g, 0, 0)),
                       pl.BlockSpec((Bt, 1, MP), lambda g: (g, 0, 0)))),
        compiler_params=pltpu.CompilerParams(
            dimension_semantics=("parallel",),   # batch shards across cores (v7x)
            vmem_limit_bytes=vmem_limit),
    )(cost_p)
    return r2c[:B, 0, :N], c2r[:B, 0, :M]


def assignment_forward(cost_matrix, threshold: float = float("inf")):
    """JAX/Pallas equivalent of Assignment.forward.

    Returns (matches [K,2] int64, unmatched_row_idx int64, unmatched_col_idx int64).
    """
    cost_matrix = jnp.asarray(cost_matrix, jnp.float32)
    N, M = cost_matrix.shape
    # `_no_match` branch (static shape check, mirrors the torch code path).
    if min(N, M) == 0:
        return (np.empty((0, 2), dtype=np.int64),
                np.arange(N, dtype=np.int64),
                np.arange(M, dtype=np.int64))

    # TODO(synk): `_assign` is abstract in the reference; a deterministic greedy
    #             (row-major argmin) LAP is the concrete solver used here.
    # TODO(synk): a single matrix means B=1; on v7x one TensorCore idles --
    #             batch independent cost matrices into one call when possible.
    r2c, c2r = assignment_solve_batched(cost_matrix[None], threshold)
    r2c, c2r = jax.block_until_ready((r2c, c2r))

    # Host-side packing: matches / unmatched are dynamically shaped (as in torch).
    r2c = np.asarray(r2c)[0]
    c2r = np.asarray(c2r)[0]
    matched_rows = np.nonzero(r2c >= 0)[0]
    if matched_rows.size:
        matches = np.stack([matched_rows, r2c[matched_rows]], axis=1).astype(np.int64)
    else:
        matches = np.empty((0, 2), dtype=np.int64)
    unmatched_rows = np.nonzero(r2c < 0)[0].astype(np.int64)
    unmatched_cols = np.nonzero(c2r < 0)[0].astype(np.int64)
    return matches, unmatched_rows, unmatched_cols


def _greedy_ref(cost, threshold):
    """NumPy reference: same thresholding + greedy row-major-argmin LAP."""
    w = np.where(cost < np.float32(threshold), cost, np.inf).astype(np.float32)
    N, M = w.shape
    r2c = np.full(N, -1, np.int64)
    c2r = np.full(M, -1, np.int64)
    for _ in range(min(N, M)):
        mn = w.min()
        if not np.isfinite(mn):
            break
        r, c = np.unravel_index(np.argmin(w), w.shape)
        r2c[r] = c
        c2r[c] = r
        w[r, :] = np.inf
        w[:, c] = np.inf
    return r2c, c2r


if __name__ == "__main__":
    key = jax.random.PRNGKey(0)
    k_single, k_batch, k_large = jax.random.split(key, 3)

    # --- Single-matrix path (Assignment.forward semantics) -------------------
    N, M = 8, 16
    threshold = 0.7
    cost = jax.random.uniform(k_single, (N, M), dtype=jnp.float32)
    matches, unmatched_rows, unmatched_cols = assignment_forward(cost, threshold)

    cost_np = np.asarray(cost)
    r2c_exp, c2r_exp = _greedy_ref(cost_np, threshold)

    got_r2c = np.full(N, -1, np.int64)
    if matches.shape[0] > 0:
        got_r2c[matches[:, 0]] = matches[:, 1]
    assert np.array_equal(got_r2c, r2c_exp)
    assert np.array_equal(np.nonzero(r2c_exp < 0)[0], unmatched_rows)
    assert np.array_equal(np.nonzero(c2r_exp < 0)[0], unmatched_cols)

    assert matches.shape[1] == 2
    assert len(set(matches[:, 0].tolist())) == matches.shape[0]
    assert len(set(matches[:, 1].tolist())) == matches.shape[0]
    if matches.shape[0] > 0:
        assert np.all(cost_np[matches[:, 0], matches[:, 1]] < threshold)
    assert matches.shape[0] + unmatched_rows.shape[0] == N
    assert matches.shape[0] + unmatched_cols.shape[0] == M

    # --- Batched small-matrix path (Bt matrices per grid step + padding) -----
    B = 20
    batch_cost = jax.random.uniform(k_batch, (B, N, M), dtype=jnp.float32)
    r2c_b, c2r_b = jax.block_until_ready(
        assignment_solve_batched(batch_cost, threshold))
    r2c_b = np.asarray(r2c_b)
    c2r_b = np.asarray(c2r_b)
    for b in range(B):
        rr, cc = _greedy_ref(np.asarray(batch_cost[b]), threshold)
        assert np.array_equal(r2c_b[b].astype(np.int64), rr)
        assert np.array_equal(c2r_b[b].astype(np.int64), cc)

    # --- Large-matrix path (while_loop early exit, heavy thresholding) -------
    BL, NL, ML = 2, 96, 160
    large_cost = jax.random.uniform(k_large, (BL, NL, ML), dtype=jnp.float32)
    r2c_l, c2r_l = jax.block_until_ready(
        assignment_solve_batched(large_cost, 0.2))
    r2c_l = np.asarray(r2c_l)
    c2r_l = np.asarray(c2r_l)
    for b in range(BL):
        rr, cc = _greedy_ref(np.asarray(large_cost[b]), 0.2)
        assert np.array_equal(r2c_l[b].astype(np.int64), rr)
        assert np.array_equal(c2r_l[b].astype(np.int64), cc)

    print("KERNEL_OK")
</pallas_src>

<mosaic_0001>
module attributes {stable_mosaic.version = 11 : i64} {
  func.func @_assignment_kernel(%arg0: i32, %arg1: memref<1x8x128xf32, #tpu.memory_space<vmem>>, %arg2: memref<1x1x128xi32, #tpu.memory_space<vmem>>, %arg3: memref<1x1x128xi32, #tpu.memory_space<vmem>>) attributes {dimension_semantics = [#tpu.dimension_semantics<parallel>], iteration_bounds = array<i64: 1>, scalar_prefetch = 0 : i64, scratch_operands = 0 : i64, tpu.core_type = #tpu.core_type<tc>, window_params = [{transform_indices = @transform_0, window_bounds = array<i64: 1, 8, 128>}, {transform_indices = @transform_1, window_bounds = array<i64: 1, 1, 128>}, {transform_indices = @transform_2, window_bounds = array<i64: 1, 1, 128>}]} {
    %c0 = arith.constant 0 : index
    %c0_0 = arith.constant 0 : index
    %c0_1 = arith.constant 0 : index
    %0 = vector.load %arg1[%c0, %c0_0, %c0_1] : memref<1x8x128xf32, #tpu.memory_space<vmem>>, vector<1x8x128xf32>
    %cst = arith.constant 0.699999988 : f32
    %1 = vector.broadcast %cst : f32 to vector<1x8x128xf32>
    %2 = arith.cmpf olt, %0, %1 : vector<1x8x128xf32>
    %cst_2 = arith.constant 0x7F800000 : f32
    %3 = vector.broadcast %cst_2 : f32 to vector<1x8x128xf32>
    %4 = arith.select %2, %0, %3 : vector<1x8x128xi1>, vector<1x8x128xf32>
    %5 = tpu.iota {dimensions = array<i32: 1>} : vector<1x8x1xi32>
    %6 = tpu.iota {dimensions = array<i32: 2>} : vector<1x1x128xi32>
    %7 = tpu.iota {dimensions = array<i32: 2>} : vector<1x1x128xi32>
    %8 = tpu.iota {dimensions = array<i32: 2>} : vector<1x1x128xi32>
    %c-1_i32 = arith.constant -1 : i32
    %9 = vector.broadcast %c-1_i32 : i32 to vector<1x1x128xi32>
    %c-1_i32_3 = arith.constant -1 : i32
    %10 = vector.broadcast %c-1_i32_3 : i32 to vector<1x1x128xi32>
    %cst_4 = arith.constant 0x7F800000 : f32
    %c0_i32 = arith.constant 0 : i32
    %cst_5 = arith.constant dense<0x7F800000> : vector<1x8xf32>
    %11 = vector.multi_reduction <minimumf>, %4, %cst_5 [2] : vector<1x8x128xf32> to vector<1x8xf32>
    %12 = vector.shape_cast %11 : vector<1x8xf32> to vector<1x8x1xf32>
    %13 = vector.broadcast %12 : vector<1x8x1xf32> to vector<1x8x128xf32>
    %14 = arith.cmpf ole, %4, %13 : vector<1x8x128xf32>
    %c128_i32 = arith.constant 128 : i32
    %15 = vector.shape_cast %6 : vector<1x1x128xi32> to vector<1x1x128xi32>
    %16 = vector.broadcast %15 : vector<1x1x128xi32> to vector<1x8x128xi32>
    %17 = vector.broadcast %c128_i32 : i32 to vector<1x8x128xi32>
    %18 = arith.select %14, %16, %17 : vector<1x8x128xi1>, vector<1x8x128xi32>
    %cst_6 = arith.constant dense<2147483647> : vector<1x8xi32>
    %19 = vector.multi_reduction <minsi>, %18, %cst_6 [2] : vector<1x8x128xi32> to vector<1x8xi32>
    %20 = vector.shape_cast %19 : vector<1x8xi32> to vector<1x8x1xi32>
    %cst_7 = arith.constant dense<0x7F800000> : vector<1x1xf32>
    %21 = vector.multi_reduction <minimumf>, %12, %cst_7 [1] : vector<1x8x1xf32> to vector<1x1xf32>
    %22 = vector.shape_cast %21 : vector<1x1xf32> to vector<1x1x1xf32>
    %23 = vector.broadcast %cst_4 : f32 to vector<1x1x1xf32>
    %24 = arith.cmpf olt, %22, %23 : vector<1x1x1xf32>
    %25 = vector.broadcast %22 : vector<1x1x1xf32> to vector<1x8x1xf32>
    %26 = arith.cmpf ole, %12, %25 : vector<1x8x1xf32>
    %c8_i32 = arith.constant 8 : i32
    %27 = vector.broadcast %c8_i32 : i32 to vector<1x8x1xi32>
    %28 = arith.select %26, %5, %27 : vector<1x8x1xi1>, vector<1x8x1xi32>
    %cst_8 = arith.constant dense<2147483647> : vector<1x1xi32>
    %29 = vector.multi_reduction <minsi>, %28, %cst_8 [1] : vector<1x8x1xi32> to vector<1x1xi32>
    %30 = vector.shape_cast %29 : vector<1x1xi32> to vector<1x1x1xi32>
    %31 = vector.broadcast %30 : vector<1x1x1xi32> to vector<1x8x1xi32>
    %32 = arith.cmpi eq, %5, %31 : vector<1x8x1xi32>
    %c128_i32_9 = arith.constant 128 : i32
    %33 = vector.broadcast %c128_i32_9 : i32 to vector<1x8x1xi32>
    %34 = arith.select %32, %20, %33 : vector<1x8x1xi1>, vector<1x8x1xi32>
    %cst_10 = arith.constant dense<2147483647> : vector<1x1xi32>
    %35 = vector.multi_reduction <minsi>, %34, %cst_10 [1] : vector<1x8x1xi32> to vector<1x1xi32>
    %36 = vector.shape_cast %35 : vector<1x1xi32> to vector<1x1x1xi32>
    %37 = vector.broadcast %30 : vector<1x1x1xi32> to vector<1x1x128xi32>
    %38 = arith.cmpi eq, %7, %37 : vector<1x1x128xi32>
    %39 = vector.broadcast %24 : vector<1x1x1xi1> to vector<1x1x128xi1>
    %40 = arith.andi %38, %39 : vector<1x1x128xi1>
    %41 = vector.shape_cast %36 : vector<1x1x1xi32> to vector<1x1x1xi32>
    %42 = vector.broadcast %41 : vector<1x1x1xi32> to vector<1x1x128xi32>
    %43 = arith.select %40, %42, %9 : vector<1x1x128xi1>, vector<1x1x128xi32>
    %44 = vector.broadcast %36 : vector<1x1x1xi32> to vector<1x1x128xi32>
    %45 = arith.cmpi eq, %8, %44 : vector<1x1x128xi32>
    %46 = vector.broadcast %24 : vector<1x1x1xi1> to vector<1x1x128xi1>
    %47 = arith.andi %45, %46 : vector<1x1x128xi1>
    %48 = vector.shape_cast %30 : vector<1x1x1xi32> to vector<1x1x1xi32>
    %49 = vector.broadcast %48 : vector<1x1x1xi32> to vector<1x1x128xi32>
    %50 = arith.select %47, %49, %10 : vector<1x1x128xi1>, vector<1x1x128xi32>
    %51 = vector.broadcast %30 : vector<1x1x1xi32> to vector<1x8x1xi32>
    %52 = arith.cmpi eq, %5, %51 : vector<1x8x1xi32>
    %53 = vector.broadcast %36 : vector<1x1x1xi32> to vector<1x1x128xi32>
    %54 = arith.cmpi eq, %6, %53 : vector<1x1x128xi32>
    %55 = vector.broadcast %52 : vector<1x8x1xi1> to vector<1x8x128xi1>
    %56 = vector.broadcast %54 : vector<1x1x128xi1> to vector<1x8x128xi1>
    %57 = arith.ori %55, %56 : vector<1x8x128xi1>
    %58 = vector.broadcast %24 : vector<1x1x1xi1> to vector<1x8x128xi1>
    %59 = arith.andi %57, %58 : vector<1x8x128xi1>
    %60 = vector.broadcast %cst_4 : f32 to vector<1x8x128xf32>
    %61 = arith.select %59, %60, %4 : vector<1x8x128xi1>, vector<1x8x128xf32>
    %c1_i32 = arith.constant 1 : i32
    %cst_11 = arith.constant dense<0x7F800000> : vector<1x8xf32>
    %62 = vector.multi_reduction <minimumf>, %61, %cst_11 [2] : vector<1x8x128xf32> to vector<1x8xf32>
    %63 = vector.shape_cast %62 : vector<1x8xf32> to vector<1x8x1xf32>
    %64 = vector.broadcast %63 : vector<1x8x1xf32> to vector<1x8x128xf32>
    %65 = arith.cmpf ole, %61, %64 : vector<1x8x128xf32>
    %c128_i32_12 = arith.constant 128 : i32
    %66 = vector.shape_cast %6 : vector<1x1x128xi32> to vector<1x1x128xi32>
    %67 = vector.broadcast %66 : vector<1x1x128xi32> to vector<1x8x128xi32>
    %68 = vector.broadcast %c128_i32_12 : i32 to vector<1x8x128xi32>
    %69 = arith.select %65, %67, %68 : vector<1x8x128xi1>, vector<1x8x128xi32>
    %cst_13 = arith.constant dense<2147483647> : vector<1x8xi32>
    %70 = vector.multi_reduction <minsi>, %69, %cst_13 [2] : vector<1x8x128xi32> to vector<1x8xi32>
    %71 = vector.shape_cast %70 : vector<1x8xi32> to vector<1x8x1xi32>
    %cst_14 = arith.constant dense<0x7F800000> : vector<1x1xf32>
    %72 = vector.multi_reduction <minimumf>, %63, %cst_14 [1] : vector<1x8x1xf32> to vector<1x1xf32>
    %73 = vector.shape_cast %72 : vector<1x1xf32> to vector<1x1x1xf32>
    %74 = vector.broadcast %cst_4 : f32 to vector<1x1x1xf32>
    %75 = arith.cmpf olt, %73, %74 : vector<1x1x1xf32>
    %76 = vector.broadcast %73 : vector<1x1x1xf32> to vector<1x8x1xf32>
    %77 = arith.cmpf ole, %63, %76 : vector<1x8x1xf32>
    %c8_i32_15 = arith.constant 8 : i32
    %78 = vector.broadcast %c8_i32_15 : i32 to vector<1x8x1xi32>
    %79 = arith.select %77, %5, %78 : vector<1x8x1xi1>, vector<1x8x1xi32>
    %cst_16 = arith.constant dense<2147483647> : vector<1x1xi32>
    %80 = vector.multi_reduction <minsi>, %79, %cst_16 [1] : vector<1x8x1xi32> to vector<1x1xi32>
    %81 = vector.shape_cast %80 : vector<1x1xi32> to vector<1x1x1xi32>
    %82 = vector.broadcast %81 : vector<1x1x1xi32> to vector<1x8x1xi32>
    %83 = arith.cmpi eq, %5, %82 : vector<1x8x1xi32>
    %c128_i32_17 = arith.constant 128 : i32
    %84 = vector.broadcast %c128_i32_17 : i32 to vector<1x8x1xi32>
    %85 = arith.select %83, %71, %84 : vector<1x8x1xi1>, vector<1x8x1xi32>
    %cst_18 = arith.constant dense<2147483647> : vector<1x1xi32>
    %86 = vector.multi_reduction <minsi>, %85, %cst_18 [1] : vector<1x8x1xi32> to vector<1x1xi32>
    %87 = vector.shape_cast %86 : vector<1x1xi32> to vector<1x1x1xi32>
    %88 = vector.broadcast %81 : vector<1x1x1xi32> to vector<1x1x128xi32>
    %89 = arith.cmpi eq, %7, %88 : vector<1x1x128xi32>
    %90 = vector.broadcast %75 : vector<1x1x1xi1> to vector<1x1x128xi1>
    %91 = arith.andi %89, %90 : vector<1x1x128xi1>
    %92 = vector.shape_cast %87 : vector<1x1x1xi32> to vector<1x1x1xi32>
    %93 = vector.broadcast %92 : vector<1x1x1xi32> to vector<1x1x128xi32>
    %94 = arith.select %91, %93, %43 : vector<1x1x128xi1>, vector<1x1x128xi32>
    %95 = vector.broadcast %87 : vector<1x1x1xi32> to vector<1x1x128xi32>
    %96 = arith.cmpi eq, %8, %95 : vector<1x1x128xi32>
    %97 = vector.broadcast %75 : vector<1x1x1xi1> to vector<1x1x128xi1>
    %98 = arith.andi %96, %97 : vector<1x1x128xi1>
    %99 = vector.shape_cast %81 : vector<1x1x1xi32> to vector<1x1x1xi32>
    %100 = vector.broadcast %99 : vector<1x1x1xi32> to vector<1x1x128xi32>
    %101 = arith.select %98, %100, %50 : vector<1x1x128xi1>, vector<1x1x128xi32>
    %102 = vector.broadcast %81 : vector<1x1x1xi32> to vector<1x8x1xi32>
    %103 = arith.cmpi eq, %5, %102 : vector<1x8x1xi32>
    %104 = vector.broadcast %87 : vector<1x1x1xi32> to vector<1x1x128xi32>
    %105 = arith.cmpi eq, %6, %104 : vector<1x1x128xi32>
    %106 = vector.broadcast %103 : vector<1x8x1xi1> to vector<1x8x128xi1>
    %107 = vector.broadcast %105 : vector<1x1x128xi1> to vector<1x8x128xi1>
    %108 = arith.ori %106, %107 : vector<1x8x128xi1>
    %109 = vector.broadcast %75 : vector<1x1x1xi1> to vector<1x8x128xi1>
    %110 = arith.andi %108, %109 : vector<1x8x128xi1>
    %111 = vector.broadcast %cst_4 : f32 to vector<1x8x128xf32>
    %112 = arith.select %110, %111, %61 : vector<1x8x128xi1>, vector<1x8x128xf32>
    %c2_i32 = arith.constant 2 : i32
    %cst_19 = arith.constant dense<0x7F800000> : vector<1x8xf32>
    %113 = vector.multi_reduction <minimumf>, %112, %cst_19 [2] : vector<1x8x128xf32> to vector<1x8xf32>
    %114 = vector.shape_cast %113 : vector<1x8xf32> to vector<1x8x1xf32>
    %115 = vector.broadcast %114 : vector<1x8x1xf32> to vector<1x8x128xf32>
    %116 = arith.cmpf ole, %112, %115 : vector<1x8x128xf32>
    %c128_i32_20 = arith.constant 128 : i32
    %117 = vector.shape_cast %6 : vector<1x1x128xi32> to vector<1x1x128xi32>
    %118 = vector.broadcast %117 : vector<1x1x128xi32> to vector<1x8x128xi32>
    %119 = vector.broadcast %c128_i32_20 : i32 to vector<1x8x128xi32>
    %120 = arith.select %116, %118, %119 : vector<1x8x128xi1>, vector<1x8x128xi32>
    %cst_21 = arith.constant dense<2147483647> : vector<1x8xi32>
    %121 = vector.multi_reduction <minsi>, %120, %cst_21 [2] : vector<1x8x128xi32> to vector<1x8xi32>
    %122 = vector.shape_cast %121 : vector<1x8xi32> to vector<1x8x1xi32>
    %cst_22 = arith.constant dense<0x7F800000> : vector<1x1xf32>
    %123 = vector.multi_reduction <minimumf>, %114, %cst_22 [1] : vector<1x8x1xf32> to vector<1x1xf32>
    %124 = vector.shape_cast %123 : vector<1x1xf32> to vector<1x1x1xf32>
    %125 = vector.broadcast %cst_4 : f32 to vector<1x1x1xf32>
    %126 = arith.cmpf olt, %124, %125 : vector<1x1x1xf32>
    %127 = vector.broadcast %124 : vector<1x1x1xf32> to vector<1x8x1xf32>
    %128 = arith.cmpf ole, %114, %127 : vector<1x8x1xf32>
    %c8_i32_23 = arith.constant 8 : i32
    %129 = vector.broadcast %c8_i32_23 : i32 to vector<1x8x1xi32>
    %130 = arith.select %128, %5, %129 : vector<1x8x1xi1>, vector<1x8x1xi32>
    %cst_24 = arith.constant dense<2147483647> : vector<1x1xi32>
    %131 = vector.multi_reduction <minsi>, %130, %cst_24 [1] : vector<1x8x1xi32> to vector<1x1xi32>
    %132 = vector.shape_cast %131 : vector<1x1xi32> to vector<1x1x1xi32>
    %133 = vector.broadcast %132 : vector<1x1x1xi32> to vector<1x8x1xi32>
    %134 = arith.cmpi eq, %5, %133 : vector<1x8x1xi32>
    %c128_i32_25 = arith.constant 128 : i32
    %135 = vector.broadcast %c128_i32_25 : i32 to vector<1x8x1xi32>
    %136 = arith.select %134, %122, %135 : vector<1x8x1xi1>, vector<1x8x1xi32>
    %cst_26 = arith.constant dense<2147483647> : vector<1x1xi32>
    %137 = vector.multi_reduction <minsi>, %136, %cst_26 [1] : vector<1x8x1xi32> to vector<1x1xi32>
    %138 = vector.shape_cast %137 : vector<1x1xi32> to vector<1x1x1xi32>
    %139 = vector.broadcast %132 : vector<1x1x1xi32> to vector<1x1x128xi32>
    %140 = arith.cmpi eq, %7, %139 : vector<1x1x128xi32>
    %141 = vector.broadcast %126 : vector<1x1x1xi1> to vector<1x1x128xi1>
    %142 = arith.andi %140, %141 : vector<1x1x128xi1>
    %143 = vector.shape_cast %138 : vector<1x1x1xi32> to vector<1x1x1xi32>
    %144 = vector.broadcast %143 : vector<1x1x1xi32> to vector<1x1x128xi32>
    %145 = arith.select %142, %144, %94 : vector<1x1x128xi1>, vector<1x1x128xi32>
    %146 = vector.broadcast %138 : vector<1x1x1xi32> to vector<1x1x128xi32>
    %147 = arith.cmpi eq, %8, %146 : vector<1x1x128xi32>
    %148 = vector.broadcast %126 : vector<1x1x1xi1> to vector<1x1x128xi1>
    %149 = arith.andi %147, %148 : vector<1x1x128xi1>
    %150 = vector.shape_cast %132 : vector<1x1x1xi32> to vector<1x1x1xi32>
    %151 = vector.broadcast %150 : vector<1x1x1xi32> to vector<1x1x128xi32>
    %152 = arith.select %149, %151, %101 : vector<1x1x128xi1>, vector<1x1x128xi32>
    %153 = vector.broadcast %132 : vector<1x1x1xi32> to vector<1x8x1xi32>
    %154 = arith.cmpi eq, %5, %153 : vector<1x8x1xi32>
    %155 = vector.broadcast %138 : vector<1x1x1xi32> to vector<1x1x128xi32>
    %156 = arith.cmpi eq, %6, %155 : vector<1x1x128xi32>
    %157 = vector.broadcast %154 : vector<1x8x1xi1> to vector<1x8x128xi1>
    %158 = vector.broadcast %156 : vector<1x1x128xi1> to vector<1x8x128xi1>
    %159 = arith.ori %157, %158 : vector<1x8x128xi1>
    %160 = vector.broadcast %126 : vector<1x1x1xi1> to vector<1x8x128xi1>
    %161 = arith.andi %159, %160 : vector<1x8x128xi1>
    %162 = vector.broadcast %cst_4 : f32 to vector<1x8x128xf32>
    %163 = arith.select %161, %162, %112 : vector<1x8x128xi1>, vector<1x8x128xf32>
    %c3_i32 = arith.constant 3 : i32
    %cst_27 = arith.constant dense<0x7F800000> : vector<1x8xf32>
    %164 = vector.multi_reduction <minimumf>, %163, %cst_27 [2] : vector<1x8x128xf32> to vector<1x8xf32>
    %165 = vector.shape_cast %164 : vector<1x8xf32> to vector<1x8x1xf32>
    %166 = vector.broadcast %165 : vector<1x8x1xf32> to vector<1x8x128xf32>
    %167 = arith.cmpf ole, %163, %166 : vector<1x8x128xf32>
    %c128_i32_28 = arith.constant 128 : i32
    %168 = vector.shape_cast %6 : vector<1x1x128xi32> to vector<1x1x128xi32>
    %169 = vector.broadcast %168 : vector<1x1x128xi32> to vector<1x8x128xi32>
    %170 = vector.broadcast %c128_i32_28 : i32 to vector<1x8x128xi32>
    %171 = arith.select %167, %169, %170 : vector<1x8x128xi1>, vector<1x8x128xi32>
    %cst_29 = arith.constant dense<2147483647> : vector<1x8xi32>
    %172 = vector.multi_reduction <minsi>, %171, %cst_29 [2] : vector<1x8x128xi32> to vector<1x8xi32>
    %173 = vector.shape_cast %172 : vector<1x8xi32> to vector<1x8x1xi32>
    %cst_30 = arith.constant dense<0x7F800000> : vector<1x1xf32>
    %174 = vector.multi_reduction <minimumf>, %165, %cst_30 [1] : vector<1x8x1xf32> to vector<1x1xf32>
    %175 = vector.shape_cast %174 : vector<1x1xf32> to vector<1x1x1xf32>
    %176 = vector.broadcast %cst_4 : f32 to vector<1x1x1xf32>
    %177 = arith.cmpf olt, %175, %176 : vector<1x1x1xf32>
    %178 = vector.broadcast %175 : vector<1x1x1xf32> to vector<1x8x1xf32>
    %179 = arith.cmpf ole, %165, %178 : vector<1x8x1xf32>
    %c8_i32_31 = arith.constant 8 : i32
    %180 = vector.broadcast %c8_i32_31 : i32 to vector<1x8x1xi32>
    %181 = arith.select %179, %5, %180 : vector<1x8x1xi1>, vector<1x8x1xi32>
    %cst_32 = arith.constant dense<2147483647> : vector<1x1xi32>
    %182 = vector.multi_reduction <minsi>, %181, %cst_32 [1] : vector<1x8x1xi32> to vector<1x1xi32>
    %183 = vector.shape_cast %182 : vector<1x1xi32> to vector<1x1x1xi32>
    %184 = vector.broadcast %183 : vector<1x1x1xi32> to vector<1x8x1xi32>
    %185 = arith.cmpi eq, %5, %184 : vector<1x8x1xi32>
    %c128_i32_33 = arith.constant 128 : i32
    %186 = vector.broadcast %c128_i32_33 : i32 to vector<1x8x1xi32>
    %187 = arith.select %185, %173, %186 : vector<1x8x1xi1>, vector<1x8x1xi32>
    %cst_34 = arith.constant dense<2147483647> : vector<1x1xi32>
    %188 = vector.multi_reduction <minsi>, %187, %cst_34 [1] : vector<1x8x1xi32> to vector<1x1xi32>
    %189 = vector.shape_cast %188 : vector<1x1xi32> to vector<1x1x1xi32>
    %190 = vector.broadcast %183 : vector<1x1x1xi32> to vector<1x1x128xi32>
    %191 = arith.cmpi eq, %7, %190 : vector<1x1x128xi32>
    %192 = vector.broadcast %177 : vector<1x1x1xi1> to vector<1x1x128xi1>
    %193 = arith.andi %191, %192 : vector<1x1x128xi1>
    %194 = vector.shape_cast %189 : vector<1x1x1xi32> to vector<1x1x1xi32>
    %195 = vector.broadcast %194 : vector<1x1x1xi32> to vector<1x1x128xi32>
    %196 = arith.select %193, %195, %145 : vector<1x1x128xi1>, vector<1x1x128xi32>
    %197 = vector.broadcast %189 : vector<1x1x1xi32> to vector<1x1x128xi32>
    %198 = arith.cmpi eq, %8, %197 : vector<1x1x128xi32>
    %199 = vector.broadcast %177 : vector<1x1x1xi1> to vector<1x1x128xi1>
    %200 = arith.andi %198, %199 : vector<1x1x128xi1>
    %201 = vector.shape_cast %183 : vector<1x1x1xi32> to vector<1x1x1xi32>
    %202 = vector.broadcast %201 : vector<1x1x1xi32> to vector<1x1x128xi32>
    %203 = arith.select %200, %202, %152 : vector<1x1x128xi1>, vector<1x1x128xi32>
    %204 = vector.broadcast %183 : vector<1x1x1xi32> to vector<1x8x1xi32>
    %205 = arith.cmpi eq, %5, %204 : vector<1x8x1xi32>
    %206 = vector.broadcast %189 : vector<1x1x1xi32> to vector<1x1x128xi32>
    %207 = arith.cmpi eq, %6, %206 : vector<1x1x128xi32>
    %208 = vector.broadcast %205 : vector<1x8x1xi1> to vector<1x8x128xi1>
    %209 = vector.broadcast %207 : vector<1x1x128xi1> to vector<1x8x128xi1>
    %210 = arith.ori %208, %209 : vector<1x8x128xi1>
    %211 = vector.broadcast %177 : vector<1x1x1xi1> to vector<1x8x128xi1>
    %212 = arith.andi %210, %211 : vector<1x8x128xi1>
    %213 = vector.broadcast %cst_4 : f32 to vector<1x8x128xf32>
    %214 = arith.select %212, %213, %163 : vector<1x8x128xi1>, vector<1x8x128xf32>
    %c4_i32 = arith.constant 4 : i32
    %cst_35 = arith.constant dense<0x7F800000> : vector<1x8xf32>
    %215 = vector.multi_reduction <minimumf>, %214, %cst_35 [2] : vector<1x8x128xf32> to vector<1x8xf32>
    %216 = vector.shape_cast %215 : vector<1x8xf32> to vector<1x8x1xf32>
    %217 = vector.broadcast %216 : vector<1x8x1xf32> to vector<1x8x128xf32>
    %218 = arith.cmpf ole, %214, %217 : vector<1x8x128xf32>
    %c128_i32_36 = arith.constant 128 : i32
    %219 = vector.shape_cast %6 : vector<1x1x128xi32> to vector<1x1x128xi32>
    %220 = vector.broadcast %219 : vector<1x1x128xi32> to vector<1x8x128xi32>
    %221 = vector.broadcast %c128_i32_36 : i32 to vector<1x8x128xi32>
    %222 = arith.select %218, %220, %221 : vector<1x8x128xi1>, vector<1x8x128xi32>
    %cst_37 = arith.constant dense<2147483647> : vector<1x8xi32>
    %223 = vector.multi_reduction <minsi>, %222, %cst_37 [2] : vector<1x8x128xi32> to vector<1x8xi32>
    %224 = vector.shape_cast %223 : vector<1x8xi32> to vector<1x8x1xi32>
    %cst_38 = arith.constant dense<0x7F800000> : vector<1x1xf32>
    %225 = vector.multi_reduction <minimumf>, %216, %cst_38 [1] : vector<1x8x1xf32> to vector<1x1xf32>
    %226 = vector.shape_cast %225 : vector<1x1xf32> to vector<1x1x1xf32>
    %227 = vector.broadcast %cst_4 : f32 to vector<1x1x1xf32>
    %228 = arith.cmpf olt, %226, %227 : vector<1x1x1xf32>
    %229 = vector.broadcast %226 : vector<1x1x1xf32> to vector<1x8x1xf32>
    %230 = arith.cmpf ole, %216, %229 : vector<1x8x1xf32>
    %c8_i32_39 = arith.constant 8 : i32
    %231 = vector.broadcast %c8_i32_39 : i32 to vector<1x8x1xi32>
    %232 = arith.select %230, %5, %231 : vector<1x8x1xi1>, vector<1x8x1xi32>
    %cst_40 = arith.constant dense<2147483647> : vector<1x1xi32>
    %233 = vector.multi_reduction <minsi>, %232, %cst_40 [1] : vector<1x8x1xi32> to vector<1x1xi32>
    %234 = vector.shape_cast %233 : vector<1x1xi32> to vector<1x1x1xi32>
    %235 = vector.broadcast %234 : vector<1x1x1xi32> to vector<1x8x1xi32>
    %236 = arith.cmpi eq, %5, %235 : vector<1x8x1xi32>
    %c128_i32_41 = arith.constant 128 : i32
    %237 = vector.broadcast %c128_i32_41 : i32 to vector<1x8x1xi32>
    %238 = arith.select %236, %224, %237 : vector<1x8x1xi1>, vector<1x8x1xi32>
    %cst_42 = arith.constant dense<2147483647> : vector<1x1xi32>
    %239 = vector.multi_reduction <minsi>, %238, %cst_42 [1] : vector<1x8x1xi32> to vector<1x1xi32>
    %240 = vector.shape_cast %239 : vector<1x1xi32> to vector<1x1x1xi32>
    %241 = vector.broadcast %234 : vector<1x1x1xi32> to vector<1x1x128xi32>
    %242 = arith.cmpi eq, %7, %241 : vector<1x1x128xi32>
    %243 = vector.broadcast %228 : vector<1x1x1xi1> to vector<1x1x128xi1>
    %244 = arith.andi %242, %243 : vector<1x1x128xi1>
    %245 = vector.shape_cast %240 : vector<1x1x1xi32> to vector<1x1x1xi32>
    %246 = vector.broadcast %245 : vector<1x1x1xi32> to vector<1x1x128xi32>
    %247 = arith.select %244, %246, %196 : vector<1x1x128xi1>, vector<1x1x128xi32>
    %248 = vector.broadcast %240 : vector<1x1x1xi32> to vector<1x1x128xi32>
    %249 = arith.cmpi eq, %8, %248 : vector<1x1x128xi32>
    %250 = vector.broadcast %228 : vector<1x1x1xi1> to vector<1x1x128xi1>
    %251 = arith.andi %249, %250 : vector<1x1x128xi1>
    %252 = vector.shape_cast %234 : vector<1x1x1xi32> to vector<1x1x1xi32>
    %253 = vector.broadcast %252 : vector<1x1x1xi32> to vector<1x1x128xi32>
    %254 = arith.select %251, %253, %203 : vector<1x1x128xi1>, vector<1x1x128xi32>
    %255 = vector.broadcast %234 : vector<1x1x1xi32> to vector<1x8x1xi32>
    %256 = arith.cmpi eq, %5, %255 : vector<1x8x1xi32>
    %257 = vector.broadcast %240 : vector<1x1x1xi32> to vector<1x1x128xi32>
    %258 = arith.cmpi eq, %6, %257 : vector<1x1x128xi32>
    %259 = vector.broadcast %256 : vector<1x8x1xi1> to vector<1x8x128xi1>
    %260 = vector.broadcast %258 : vector<1x1x128xi1> to vector<1x8x128xi1>
    %261 = arith.ori %259, %260 : vector<1x8x128xi1>
    %262 = vector.broadcast %228 : vector<1x1x1xi1> to vector<1x8x128xi1>
    %263 = arith.andi %261, %262 : vector<1x8x128xi1>
    %264 = vector.broadcast %cst_4 : f32 to vector<1x8x128xf32>
    %265 = arith.select %263, %264, %214 : vector<1x8x128xi1>, vector<1x8x128xf32>
    %c5_i32 = arith.constant 5 : i32
    %cst_43 = arith.constant dense<0x7F800000> : vector<1x8xf32>
    %266 = vector.multi_reduction <minimumf>, %265, %cst_43 [2] : vector<1x8x128xf32> to vector<1x8xf32>
    %267 = vector.shape_cast %266 : vector<1x8xf32> to vector<1x8x1xf32>
    %268 = vector.broadcast %267 : vector<1x8x1xf32> to vector<1x8x128xf32>
    %269 = arith.cmpf ole, %265, %268 : vector<1x8x128xf32>
    %c128_i32_44 = arith.constant 128 : i32
    %270 = vector.shape_cast %6 : vector<1x1x128xi32> to vector<1x1x128xi32>
    %271 = vector.broadcast %270 : vector<1x1x128xi32> to vector<1x8x128xi32>
    %272 = vector.broadcast %c128_i32_44 : i32 to vector<1x8x128xi32>
    %273 = arith.select %269, %271, %272 : vector<1x8x128xi1>, vector<1x8x128xi32>
    %cst_45 = arith.constant dense<2147483647> : vector<1x8xi32>
    %274 = vector.multi_reduction <minsi>, %273, %cst_45 [2] : vector<1x8x128xi32> to vector<1x8xi32>
    %275 = vector.shape_cast %274 : vector<1x8xi32> to vector<1x8x1xi32>
    %cst_46 = arith.constant dense<0x7F800000> : vector<1x1xf32>
    %276 = vector.multi_reduction <minimumf>, %267, %cst_46 [1] : vector<1x8x1xf32> to vector<1x1xf32>
    %277 = vector.shape_cast %276 : vector<1x1xf32> to vector<1x1x1xf32>
    %278 = vector.broadcast %cst_4 : f32 to vector<1x1x1xf32>
    %279 = arith.cmpf olt, %277, %278 : vector<1x1x1xf32>
    %280 = vector.broadcast %277 : vector<1x1x1xf32> to vector<1x8x1xf32>
    %281 = arith.cmpf ole, %267, %280 : vector<1x8x1xf32>
    %c8_i32_47 = arith.constant 8 : i32
    %282 = vector.broadcast %c8_i32_47 : i32 to vector<1x8x1xi32>
    %283 = arith.select %281, %5, %282 : vector<1x8x1xi1>, vector<1x8x1xi32>
    %cst_48 = arith.constant dense<2147483647> : vector<1x1xi32>
    %284 = vector.multi_reduction <minsi>, %283, %cst_48 [1] : vector<1x8x1xi32> to vector<1x1xi32>
    %285 = vector.shape_cast %284 : vector<1x1xi32> to vector<1x1x1xi32>
    %286 = vector.broadcast %285 : vector<1x1x1xi32> to vector<1x8x1xi32>
    %287 = arith.cmpi eq, %5, %286 : vector<1x8x1xi32>
    %c128_i32_49 = arith.constant 128 : i32
    %288 = vector.broadcast %c128_i32_49 : i32 to vector<1x8x1xi32>
    %289 = arith.select %287, %275, %288 : vector<1x8x1xi1>, vector<1x8x1xi32>
    %cst_50 = arith.constant dense<2147483647> : vector<1x1xi32>
    %290 = vector.multi_reduction <minsi>, %289, %cst_50 [1] : vector<1x8x1xi32> to vector<1x1xi32>
    %291 = vector.shape_cast %290 : vector<1x1xi32> to vector<1x1x1xi32>
    %292 = vector.broadcast %285 : vector<1x1x1xi32> to vector<1x1x128xi32>
    %293 = arith.cmpi eq, %7, %292 : vector<1x1x128xi32>
    %294 = vector.broadcast %279 : vector<1x1x1xi1> to vector<1x1x128xi1>
    %295 = arith.andi %293, %294 : vector<1x1x128xi1>
    %296 = vector.shape_cast %291 : vector<1x1x1xi32> to vector<1x1x1xi32>
    %297 = vector.broadcast %296 : vector<1x1x1xi32> to vector<1x1x128xi32>
    %298 = arith.select %295, %297, %247 : vector<1x1x128xi1>, vector<1x1x128xi32>
    %299 = vector.broadcast %291 : vector<1x1x1xi32> to vector<1x1x128xi32>
    %300 = arith.cmpi eq, %8, %299 : vector<1x1x128xi32>
    %301 = vector.broadcast %279 : vector<1x1x1xi1> to vector<1x1x128xi1>
    %302 = arith.andi %300, %301 : vector<1x1x128xi1>
    %303 = vector.shape_cast %285 : vector<1x1x1xi32> to vector<1x1x1xi32>
    %304 = vector.broadcast %303 : vector<1x1x1xi32> to vector<1x1x128xi32>
    %305 = arith.select %302, %304, %254 : vector<1x1x128xi1>, vector<1x1x128xi32>
    %306 = vector.broadcast %285 : vector<1x1x1xi32> to vector<1x8x1xi32>
    %307 = arith.cmpi eq, %5, %306 : vector<1x8x1xi32>
    %308 = vector.broadcast %291 : vector<1x1x1xi32> to vector<1x1x128xi32>
    %309 = arith.cmpi eq, %6, %308 : vector<1x1x128xi32>
    %310 = vector.broadcast %307 : vector<1x8x1xi1> to vector<1x8x128xi1>
    %311 = vector.broadcast %309 : vector<1x1x128xi1> to vector<1x8x128xi1>
    %312 = arith.ori %310, %311 : vector<1x8x128xi1>
    %313 = vector.broadcast %279 : vector<1x1x1xi1> to vector<1x8x128xi1>
    %314 = arith.andi %312, %313 : vector<1x8x128xi1>
    %315 = vector.broadcast %cst_4 : f32 to vector<1x8x128xf32>
    %316 = arith.select %314, %315, %265 : vector<1x8x128xi1>, vector<1x8x128xf32>
    %c6_i32 = arith.constant 6 : i32
    %cst_51 = arith.constant dense<0x7F800000> : vector<1x8xf32>
    %317 = vector.multi_reduction <minimumf>, %316, %cst_51 [2] : vector<1x8x128xf32> to vector<1x8xf32>
    %318 = vector.shape_cast %317 : vector<1x8xf32> to vector<1x8x1xf32>
    %319 = vector.broadcast %318 : vector<1x8x1xf32> to vector<1x8x128xf32>
    %320 = arith.cmpf ole, %316, %319 : vector<1x8x128xf32>
    %c128_i32_52 = arith.constant 128 : i32
    %321 = vector.shape_cast %6 : vector<1x1x128xi32> to vector<1x1x128xi32>
    %322 = vector.broadcast %321 : vector<1x1x128xi32> to vector<1x8x128xi32>
    %323 = vector.broadcast %c128_i32_52 : i32 to vector<1x8x128xi32>
    %324 = arith.select %320, %322, %323 : vector<1x8x128xi1>, vector<1x8x128xi32>
    %cst_53 = arith.constant dense<2147483647> : vector<1x8xi32>
    %325 = vector.multi_reduction <minsi>, %324, %cst_53 [2] : vector<1x8x128xi32> to vector<1x8xi32>
    %326 = vector.shape_cast %325 : vector<1x8xi32> to vector<1x8x1xi32>
    %cst_54 = arith.constant dense<0x7F800000> : vector<1x1xf32>
    %327 = vector.multi_reduction <minimumf>, %318, %cst_54 [1] : vector<1x8x1xf32> to vector<1x1xf32>
    %328 = vector.shape_cast %327 : vector<1x1xf32> to vector<1x1x1xf32>
    %329 = vector.broadcast %cst_4 : f32 to vector<1x1x1xf32>
    %330 = arith.cmpf olt, %328, %329 : vector<1x1x1xf32>
    %331 = vector.broadcast %328 : vector<1x1x1xf32> to vector<1x8x1xf32>
    %332 = arith.cmpf ole, %318, %331 : vector<1x8x1xf32>
    %c8_i32_55 = arith.constant 8 : i32
    %333 = vector.broadcast %c8_i32_55 : i32 to vector<1x8x1xi32>
    %334 = arith.select %332, %5, %333 : vector<1x8x1xi1>, vector<1x8x1xi32>
    %cst_56 = arith.constant dense<2147483647> : vector<1x1xi32>
    %335 = vector.multi_reduction <minsi>, %334, %cst_56 [1] : vector<1x8x1xi32> to vector<1x1xi32>
    %336 = vector.shape_cast %335 : vector<1x1xi32> to vector<1x1x1xi32>
    %337 = vector.broadcast %336 : vector<1x1x1xi32> to vector<1x8x1xi32>
    %338 = arith.cmpi eq, %5, %337 : vector<1x8x1xi32>
    %c128_i32_57 = arith.constant 128 : i32
    %339 = vector.broadcast %c128_i32_57 : i32 to vector<1x8x1xi32>
    %340 = arith.select %338, %326, %339 : vector<1x8x1xi1>, vector<1x8x1xi32>
    %cst_58 = arith.constant dense<2147483647> : vector<1x1xi32>
    %341 = vector.multi_reduction <minsi>, %340, %cst_58 [1] : vector<1x8x1xi32> to vector<1x1xi32>
    %342 = vector.shape_cast %341 : vector<1x1xi32> to vector<1x1x1xi32>
    %343 = vector.broadcast %336 : vector<1x1x1xi32> to vector<1x1x128xi32>
    %344 = arith.cmpi eq, %7, %343 : vector<1x1x128xi32>
    %345 = vector.broadcast %330 : vector<1x1x1xi1> to vector<1x1x128xi1>
    %346 = arith.andi %344, %345 : vector<1x1x128xi1>
    %347 = vector.shape_cast %342 : vector<1x1x1xi32> to vector<1x1x1xi32>
    %348 = vector.broadcast %347 : vector<1x1x1xi32> to vector<1x1x128xi32>
    %349 = arith.select %346, %348, %298 : vector<1x1x128xi1>, vector<1x1x128xi32>
    %350 = vector.broadcast %342 : vector<1x1x1xi32> to vector<1x1x128xi32>
    %351 = arith.cmpi eq, %8, %350 : vector<1x1x128xi32>
    %352 = vector.broadcast %330 : vector<1x1x1xi1> to vector<1x1x128xi1>
    %353 = arith.andi %351, %352 : vector<1x1x128xi1>
    %354 = vector.shape_cast %336 : vector<1x1x1xi32> to vector<1x1x1xi32>
    %355 = vector.broadcast %354 : vector<1x1x1xi32> to vector<1x1x128xi32>
    %356 = arith.select %353, %355, %305 : vector<1x1x128xi1>, vector<1x1x128xi32>
    %357 = vector.broadcast %336 : vector<1x1x1xi32> to vector<1x8x1xi32>
    %358 = arith.cmpi eq, %5, %357 : vector<1x8x1xi32>
    %359 = vector.broadcast %342 : vector<1x1x1xi32> to vector<1x1x128xi32>
    %360 = arith.cmpi eq, %6, %359 : vector<1x1x128xi32>
    %361 = vector.broadcast %358 : vector<1x8x1xi1> to vector<1x8x128xi1>
    %362 = vector.broadcast %360 : vector<1x1x128xi1> to vector<1x8x128xi1>
    %363 = arith.ori %361, %362 : vector<1x8x128xi1>
    %364 = vector.broadcast %330 : vector<1x1x1xi1> to vector<1x8x128xi1>
    %365 = arith.andi %363, %364 : vector<1x8x128xi1>
    %366 = vector.broadcast %cst_4 : f32 to vector<1x8x128xf32>
    %367 = arith.select %365, %366, %316 : vector<1x8x128xi1>, vector<1x8x128xf32>
    %c7_i32 = arith.constant 7 : i32
    %cst_59 = arith.constant dense<0x7F800000> : vector<1x8xf32>
    %368 = vector.multi_reduction <minimumf>, %367, %cst_59 [2] : vector<1x8x128xf32> to vector<1x8xf32>
    %369 = vector.shape_cast %368 : vector<1x8xf32> to vector<1x8x1xf32>
    %370 = vector.broadcast %369 : vector<1x8x1xf32> to vector<1x8x128xf32>
    %371 = arith.cmpf ole, %367, %370 : vector<1x8x128xf32>
    %c128_i32_60 = arith.constant 128 : i32
    %372 = vector.shape_cast %6 : vector<1x1x128xi32> to vector<1x1x128xi32>
    %373 = vector.broadcast %372 : vector<1x1x128xi32> to vector<1x8x128xi32>
    %374 = vector.broadcast %c128_i32_60 : i32 to vector<1x8x128xi32>
    %375 = arith.select %371, %373, %374 : vector<1x8x128xi1>, vector<1x8x128xi32>
    %cst_61 = arith.constant dense<2147483647> : vector<1x8xi32>
    %376 = vector.multi_reduction <minsi>, %375, %cst_61 [2] : vector<1x8x128xi32> to vector<1x8xi32>
    %377 = vector.shape_cast %376 : vector<1x8xi32> to vector<1x8x1xi32>
    %cst_62 = arith.constant dense<0x7F800000> : vector<1x1xf32>
    %378 = vector.multi_reduction <minimumf>, %369, %cst_62 [1] : vector<1x8x1xf32> to vector<1x1xf32>
    %379 = vector.shape_cast %378 : vector<1x1xf32> to vector<1x1x1xf32>
    %380 = vector.broadcast %cst_4 : f32 to vector<1x1x1xf32>
    %381 = arith.cmpf olt, %379, %380 : vector<1x1x1xf32>
    %382 = vector.broadcast %379 : vector<1x1x1xf32> to vector<1x8x1xf32>
    %383 = arith.cmpf ole, %369, %382 : vector<1x8x1xf32>
    %c8_i32_63 = arith.constant 8 : i32
    %384 = vector.broadcast %c8_i32_63 : i32 to vector<1x8x1xi32>
    %385 = arith.select %383, %5, %384 : vector<1x8x1xi1>, vector<1x8x1xi32>
    %cst_64 = arith.constant dense<2147483647> : vector<1x1xi32>
    %386 = vector.multi_reduction <minsi>, %385, %cst_64 [1] : vector<1x8x1xi32> to vector<1x1xi32>
    %387 = vector.shape_cast %386 : vector<1x1xi32> to vector<1x1x1xi32>
    %388 = vector.broadcast %387 : vector<1x1x1xi32> to vector<1x8x1xi32>
    %389 = arith.cmpi eq, %5, %388 : vector<1x8x1xi32>
    %c128_i32_65 = arith.constant 128 : i32
    %390 = vector.broadcast %c128_i32_65 : i32 to vector<1x8x1xi32>
    %391 = arith.select %389, %377, %390 : vector<1x8x1xi1>, vector<1x8x1xi32>
    %cst_66 = arith.constant dense<2147483647> : vector<1x1xi32>
    %392 = vector.multi_reduction <minsi>, %391, %cst_66 [1] : vector<1x8x1xi32> to vector<1x1xi32>
    %393 = vector.shape_cast %392 : vector<1x1xi32> to vector<1x1x1xi32>
    %394 = vector.broadcast %387 : vector<1x1x1xi32> to vector<1x1x128xi32>
    %395 = arith.cmpi eq, %7, %394 : vector<1x1x128xi32>
    %396 = vector.broadcast %381 : vector<1x1x1xi1> to vector<1x1x128xi1>
    %397 = arith.andi %395, %396 : vector<1x1x128xi1>
    %398 = vector.shape_cast %393 : vector<1x1x1xi32> to vector<1x1x1xi32>
    %399 = vector.broadcast %398 : vector<1x1x1xi32> to vector<1x1x128xi32>
    %400 = arith.select %397, %399, %349 : vector<1x1x128xi1>, vector<1x1x128xi32>
    %401 = vector.broadcast %393 : vector<1x1x1xi32> to vector<1x1x128xi32>
    %402 = arith.cmpi eq, %8, %401 : vector<1x1x128xi32>
    %403 = vector.broadcast %381 : vector<1x1x1xi1> to vector<1x1x128xi1>
    %404 = arith.andi %402, %403 : vector<1x1x128xi1>
    %405 = vector.shape_cast %387 : vector<1x1x1xi32> to vector<1x1x1xi32>
    %406 = vector.broadcast %405 : vector<1x1x1xi32> to vector<1x1x128xi32>
    %407 = arith.select %404, %406, %356 : vector<1x1x128xi1>, vector<1x1x128xi32>
    %408 = vector.broadcast %387 : vector<1x1x1xi32> to vector<1x8x1xi32>
    %409 = arith.cmpi eq, %5, %408 : vector<1x8x1xi32>
    %410 = vector.broadcast %393 : vector<1x1x1xi32> to vector<1x1x128xi32>
    %411 = arith.cmpi eq, %6, %410 : vector<1x1x128xi32>
    %412 = vector.broadcast %409 : vector<1x8x1xi1> to vector<1x8x128xi1>
    %413 = vector.broadcast %411 : vector<1x1x128xi1> to vector<1x8x128xi1>
    %414 = arith.ori %412, %413 : vector<1x8x128xi1>
    %415 = vector.broadcast %381 : vector<1x1x1xi1> to vector<1x8x128xi1>
    %416 = arith.andi %414, %415 : vector<1x8x128xi1>
    %417 = vector.broadcast %cst_4 : f32 to vector<1x8x128xf32>
    %418 = arith.select %416, %417, %367 : vector<1x8x128xi1>, vector<1x8x128xf32>
    %c0_67 = arith.constant 0 : index
    %c0_68 = arith.constant 0 : index
    %c0_69 = arith.constant 0 : index
    %419 = vector.load %arg2[%c0_67, %c0_68, %c0_69] : memref<1x1x128xi32, #tpu.memory_space<vmem>>, vector<1x1x128xi32>
    tpu.vector_store %arg2[%c0_67, %c0_68, %c0_69], %400 {strides = array<i32>} : memref<1x1x128xi32, #tpu.memory_space<vmem>>, vector<1x1x128xi32>,
    %c0_70 = arith.constant 0 : index
    %c0_71 = arith.constant 0 : index
    %c0_72 = arith.constant 0 : index
    %420 = vector.load %arg3[%c0_70, %c0_71, %c0_72] : memref<1x1x128xi32, #tpu.memory_space<vmem>>, vector<1x1x128xi32>
    tpu.vector_store %arg3[%c0_70, %c0_71, %c0_72], %407 {strides = array<i32>} : memref<1x1x128xi32, #tpu.memory_space<vmem>>, vector<1x1x128xi32>,
    return
  }
  func.func @transform_0(%arg0: i32) -> (i32, i32, i32) {
    %c0_i32 = arith.constant 0 : i32
    %c0_i32_0 = arith.constant 0 : i32
    %c0_i32_1 = arith.constant 0 : i32
    return %arg0, %c0_i32, %c0_i32_0 : i32, i32, i32
  }
  func.func @transform_1(%arg0: i32) -> (i32, i32, i32) {
    %c0_i32 = arith.constant 0 : i32
    %c0_i32_0 = arith.constant 0 : i32
    %c0_i32_1 = arith.constant 0 : i32
    return %arg0, %c0_i32, %c0_i32_0 : i32, i32, i32
  }
  func.func @transform_2(%arg0: i32) -> (i32, i32, i32) {
    %c0_i32 = arith.constant 0 : i32
    %c0_i32_0 = arith.constant 0 : i32
    %c0_i32_1 = arith.constant 0 : i32
    return %arg0, %c0_i32, %c0_i32_0 : i32, i32, i32
  }
}

</mosaic_0001>

<bundles_post_ra>
// kernel: tpu_custom_call.1
= control target key start
LH: loop header
LB: loop body
LE: loop exit
PB: predicated region body
PF: predicated region fallthrough
CT: control target
= control target key end

     0   :  { %8 = vsyncpa [#allocation3], 0  ;;  %s865_s0 = inlined_call_operand.hbm [shape: f32[1,8,128], index: 0, kind: input, shape index: {}]   ;;  %s866_s1 = inlined_call_operand.hbm [shape: s32[1,1,128], index: 1, kind: output, shape index: {0}]   ;;  %s867_s2 = inlined_call_operand.hbm [shape: s32[1,1,128], index: 2, kind: output, shape index: {1}]  }
   0x1   :  { %9 = vsyncpa [#allocation4], 0 }
   0x2   :  { %10 = vsyncpa [#allocation7], 0  ;;  %s626_s9 = smov [#allocation2]   ;;  %s554_s13 = scalar_lea.hbm %s865_s0, 128 }
   0x3   :  { %s17_s10 = sshll.u32 %s626_s9, 4  ;;  %p555_p0 = scmp.ne.s32.totalorder %s865_s0, %s554_s13  ;;  %s18_s10 = int_to_ptr.vmem [resolvable:$true] %s17_s10 }
   0x4   :  { %p558_p1 = scmp.lt.u32.totalorder %s554_s13, %s865_s0 }
   0x6   :  { %p560_p2 = pnand %p558_p1, %p555_p0 }
   0x8   :  { %563 = shalt.err (!%p560_p2)
}
   0x9   :  { %s564_s18 = scalar_lea.vmem %s18_s10, 128  ;;  %p569_p4 = scmp.lt.s32.totalorder %s18_s10, %s18_s10 }
   0xa   :  { %p565_p3 = scmp.ne.s32.totalorder %s18_s10, %s564_s18  ;;  %p570_p5 = scmp.lt.s32.totalorder %s564_s18, %s564_s18 }
   0xc   :  { %p571_p6 = por %p570_p5, %p569_p4 }
   0xe   :  { %p572_p7 = pnand %p571_p6, %p565_p3 }
  0x10   :  { %575 = shalt.err (!%p572_p7)
}
  0x11   :  { %20 = dma.hbm_to_vmem [thread:$0]  %s865_s0, 128, %s18_s10, [#allocation3]  }
  0x12   :  { %620 = dma.done.wait [#allocation3], 128  }
  0x13   :  { %621 = vsyncadd [#allocation3], 4294967168  ;;  %v24_v0 = vld [vmem:[#allocation2] sm:$0xff]  ;;  %v27_v2 = vlaneseq  ;;  %s627_s0 = smov [#allocation5]   ;;  %s628_s22 = smov [#allocation6]  }
  0x14   :  { %vm25_vm0 = vcmp.lt.f32.partialorder %v24_v0, 0.7  ;;  %s528_s21 = sshll.u32 %s627_s0, 4  ;;  %s538_s23 = sshll.u32 %s628_s22, 4  ;;  %s529_s21 = int_to_ptr.vmem [resolvable:$true] %s528_s21  ;;  %s826_s23 = int_to_ptr.vmem [resolvable:$true] %s538_s23 }
  0x15   :  { %v26_v1 = vsel %vm25_vm0, %v24_v0, inf  ;;  %v656_v3 = vand.u32 127, %v27_v2  ;;  %v661_v18 = vshrl.u32 %v27_v2, 7  ;;  %s576_s24 = scalar_lea.vmem %s529_s21, 16  ;;  %s580_s25 = scalar_lea.vmem %s529_s21, 32 }
  0x16   :  { %31 = vmin.xlane.f32.xlu0 %v26_v1  ;;  %p577_p8 = scmp.ne.s32.totalorder %s529_s21, %s576_s24  ;;  %p581_p9 = scmp.lt.s32.totalorder %s529_s21, %s529_s21 }
  0x17   :  { %p582_p10 = scmp.lt.s32.totalorder %s580_s25, %s576_s24 }
  0x19   :  { %p583_p11 = por %p582_p10, %p581_p9 }
  0x1b   :  { %p584_p12 = pnand %p583_p11, %p577_p8 }
  0xa3   :  { %v32_v4 = vpop.xlane.xlu0 %31 }
  0xa4   :  { %vm33_vm1 = vcmp.le.f32.partialorder %v26_v1, %v32_v4  ;;  %v49_v12 = vrot.slane %v32_v4, 4 }
  0xa5   :  { %v34_v5 = vsel %vm33_vm1, %v656_v3, 128 }
  0xa6   :  { %v36_v6 = vshra.s32 %v34_v5, 16  ;;  %v35_v8 = vand.u32 65535, %v34_v5  ;;  %v50_v13 = vmin.f32 %v32_v4, %v49_v12 }
  0xa8   :  { %v38_v7 = vcvt.s32.f32 %v36_v6  ;;  %v37_v10 = vcvt.s32.f32 %v35_v8  ;;  %v51_v14 = vrot.slane %v50_v13, 2 }
  0xaa   :  { %39 = vmin.xlane.f32.xlu0 %v38_v7  ;;  %v52_v15 = vmin.f32 %v50_v13, %v51_v14 }
  0xac   :  { %v53_v16 = vrot.slane %v52_v15, 1 }
  0xae   :  { %v659_v17 = vmin.f32 %v52_v15, %v53_v16 }
  0xb0   :  { %vm56_vm3 = vcmp.le.f32.partialorder %v32_v4, %v659_v17  ;;  %vm55_vm12 = vcmp.lt.f32.partialorder %v659_v17, inf }
  0xb1   :  { %v57_v19 = vsel %vm56_vm3, %v661_v18, 8 }
  0xb2   :  { %v58_v20 = vrot.slane %v57_v19, 4 }
  0xb4   :  { %vm59_vm4 = vcmp.lt.s32.totalorder %v57_v19, %v58_v20 }
  0xb5   :  { %v60_v21 = vsel %vm59_vm4, %v57_v19, %v58_v20 }
  0xb6   :  { %v61_v22 = vrot.slane %v60_v21, 2 }
  0xb8   :  { %vm62_vm5 = vcmp.lt.s32.totalorder %v60_v21, %v61_v22 }
  0xb9   :  { %v63_v23 = vsel %vm62_vm5, %v60_v21, %v61_v22 }
  0xba   :  { %v64_v24 = vrot.slane %v63_v23, 1 }
  0xbc   :  { %vm65_vm6 = vcmp.lt.s32.totalorder %v63_v23, %v64_v24 }
  0xbd   :  { %v665_v28 = vsel %vm65_vm6, %v63_v23, %v64_v24 }
  0xbe   :  { %vm67_vm7 = vcmp.eq.s32.totalorder %v661_v18, %v665_v28 }
 0x137   :  { %v40_v9 = vpop.xlane.xlu0 %39 }
 0x138   :  { %vm41_vm2 = vcmp.eq.f32.partialorder %v38_v7, %v40_v9  ;;  %v46_v25 = vcvt.f32.s32 %v40_v9 }
 0x139   :  { %v42_v11 = vsel %vm41_vm2, %v37_v10, inf }
 0x13a   :  { %43 = vmin.xlane.f32.xlu1 %v42_v11  ;;  %v47_v27 = vshll.u32 %v46_v25, 16 }
 0x1c7   :  { %v44_v26 = vpop.xlane.xlu1 %43 }
 0x1c8   :  { %v45_v29 = vcvt.f32.s32 %v44_v26 }
 0x1ca   :  { %v48_v30 = vadd.s32 %v47_v27, %v45_v29 }
 0x1cc   :  { %v68_v31 = vsel %vm67_vm7, %v48_v30, 128 }
 0x1cd   :  { %v69_v32 = vrot.slane %v68_v31, 4 }
 0x1cf   :  { %vm70_vm8 = vcmp.lt.s32.totalorder %v68_v31, %v69_v32 }
 0x1d0   :  { %v71_v33 = vsel %vm70_vm8, %v68_v31, %v69_v32  ;;  %vm78_vm8 = vcmp.eq.s32.totalorder %v656_v3, %v665_v28 }
 0x1d1   :  { %v72_v34 = vrot.slane %v71_v33, 2 }
 0x1d3   :  { %vm73_vm9 = vcmp.lt.s32.totalorder %v71_v33, %v72_v34 }
 0x1d4   :  { %v74_v35 = vsel %vm73_vm9, %v71_v33, %v72_v34 }
 0x1d5   :  { %v75_v36 = vrot.slane %v74_v35, 1 }
 0x1d7   :  { %vm76_vm10 = vcmp.lt.s32.totalorder %v74_v35, %v75_v36 }
 0x1d8   :  { %v77_v37 = vsel %vm76_vm10, %v74_v35, %v75_v36  ;;  %vm81_vm10 = vmand %vm78_vm8, %vm55_vm12 }
 0x1d9   :  { %vm83_vm11 = vcmp.eq.s32.totalorder %v656_v3, %v77_v37  ;;  %v82_v8 = vsel %vm81_vm10, %v77_v37, 4294967295 }
 0x1da   :  { %vm90_vm13 = vmor %vm67_vm7, %vm83_vm11 }
 0x1db   :  { %vm91_vm14 = vmand %vm90_vm13, %vm55_vm12 }
 0x1dc   :  { %v92_v38 = vsel %vm91_vm14, inf, %v26_v1 }
 0x1dd   :  { %93 = vmin.xlane.f32.xlu1 %v92_v38 }
 0x26a   :  { %v94_v39 = vpop.xlane.xlu1 %93 }
 0x26b   :  { %vm95_vm15 = vcmp.le.f32.partialorder %v92_v38, %v94_v39  ;;  %v111_v47 = vrot.slane %v94_v39, 4 }
 0x26c   :  { %v96_v40 = vsel %vm95_vm15, %v656_v3, 128 }
 0x26d   :  { %v98_v41 = vshra.s32 %v96_v40, 16  ;;  %v97_v43 = vand.u32 65535, %v96_v40  ;;  %v112_v48 = vmin.f32 %v94_v39, %v111_v47 }
 0x26f   :  { %v100_v42 = vcvt.s32.f32 %v98_v41  ;;  %v99_v45 = vcvt.s32.f32 %v97_v43  ;;  %v113_v49 = vrot.slane %v112_v48, 2 }
 0x271   :  { %101 = vmin.xlane.f32.xlu0 %v100_v42  ;;  %v114_v50 = vmin.f32 %v112_v48, %v113_v49 }
 0x273   :  { %v115_v51 = vrot.slane %v114_v50, 1 }
 0x275   :  { %v116_v52 = vmin.f32 %v114_v50, %v115_v51 }
 0x277   :  { %vm118_vm1 = vcmp.le.f32.partialorder %v94_v39, %v116_v52  ;;  %vm117_vm13 = vcmp.lt.f32.partialorder %v116_v52, inf }
 0x278   :  { %v119_v53 = vsel %vm118_vm1, %v661_v18, 8 }
 0x279   :  { %v120_v54 = vrot.slane %v119_v53, 4 }
 0x27b   :  { %vm121_vm2 = vcmp.lt.s32.totalorder %v119_v53, %v120_v54 }
 0x27c   :  { %v122_v55 = vsel %vm121_vm2, %v119_v53, %v120_v54 }
 0x27d   :  { %v123_v56 = vrot.slane %v122_v55, 2 }
 0x27f   :  { %vm124_vm3 = vcmp.lt.s32.totalorder %v122_v55, %v123_v56 }
 0x280   :  { %v125_v57 = vsel %vm124_vm3, %v122_v55, %v123_v56 }
 0x281   :  { %v126_v58 = vrot.slane %v125_v57, 1 }
 0x283   :  { %vm127_vm4 = vcmp.lt.s32.totalorder %v125_v57, %v126_v58 }
 0x284   :  { %v128_v62 = vsel %vm127_vm4, %v125_v57, %v126_v58 }
 0x285   :  { %vm129_vm5 = vcmp.eq.s32.totalorder %v661_v18, %v128_v62  ;;  %vm140_vm9 = vcmp.eq.s32.totalorder %v656_v3, %v128_v62 }
 0x286   :  { %vm143_vm15 = vmand %vm140_vm9, %vm117_vm13 }
 0x2fe   :  { %v102_v44 = vpop.xlane.xlu0 %101 }
 0x2ff   :  { %vm103_vm0 = vcmp.eq.f32.partialorder %v100_v42, %v102_v44  ;;  %v108_v59 = vcvt.f32.s32 %v102_v44 }
 0x300   :  { %v104_v46 = vsel %vm103_vm0, %v99_v45, inf  ;;  %vm84_vm0 = vmand %vm83_vm11, %vm55_vm12 }
 0x301   :  { %105 = vmin.xlane.f32.xlu1 %v104_v46  ;;  %v109_v61 = vshll.u32 %v108_v59, 16  ;;  %v85_v11 = vsel %vm84_vm0, %v665_v28, 4294967295 }
 0x38e   :  { %v106_v60 = vpop.xlane.xlu1 %105 }
 0x38f   :  { %v107_v63 = vcvt.f32.s32 %v106_v60 }
 0x391   :  { %v110_v0 = vadd.s32 %v109_v61, %v107_v63 }
 0x393   :  { %v130_v1 = vsel %vm129_vm5, %v110_v0, 128 }
 0x394   :  { %v131_v2 = vrot.slane %v130_v1, 4 }
 0x396   :  { %vm132_vm6 = vcmp.lt.s32.totalorder %v130_v1, %v131_v2 }
 0x397   :  { %v133_v4 = vsel %vm132_vm6, %v130_v1, %v131_v2 }
 0x398   :  { %v134_v5 = vrot.slane %v133_v4, 2 }
 0x39a   :  { %vm135_vm7 = vcmp.lt.s32.totalorder %v133_v4, %v134_v5 }
 0x39b   :  { %v136_v6 = vsel %vm135_vm7, %v133_v4, %v134_v5 }
 0x39c   :  { %v137_v7 = vrot.slane %v136_v6, 1 }
 0x39e   :  { %vm138_vm14 = vcmp.lt.s32.totalorder %v136_v6, %v137_v7 }
 0x39f   :  { %v139_v9 = vsel %vm138_vm14, %v136_v6, %v137_v7 }
 0x3a0   :  { %vm145_vm1 = vcmp.eq.s32.totalorder %v656_v3, %v139_v9  ;;  %v690_v10 = vsel %vm143_vm15, %v139_v9, %v82_v8 }
 0x3a1   :  { %vm152_vm2 = vmor %vm129_vm5, %vm145_vm1 }
 0x3a2   :  { %vm153_vm3 = vmand %vm152_vm2, %vm117_vm13 }
 0x3a3   :  { %v154_v12 = vsel %vm153_vm3, inf, %v92_v38  ;;  %vm146_vm4 = vmand %vm145_vm1, %vm117_vm13 }
 0x3a4   :  { %155 = vmin.xlane.f32.xlu0 %v154_v12  ;;  %v695_v13 = vsel %vm146_vm4, %v128_v62, %v85_v11 }
 0x431   :  { %v156_v14 = vpop.xlane.xlu0 %155 }
 0x432   :  { %vm157_vm6 = vcmp.le.f32.partialorder %v154_v12, %v156_v14  ;;  %v173_v23 = vrot.slane %v156_v14, 4 }
 0x433   :  { %v158_v15 = vsel %vm157_vm6, %v656_v3, 128 }
 0x434   :  { %v160_v16 = vshra.s32 %v158_v15, 16  ;;  %v159_v19 = vand.u32 65535, %v158_v15  ;;  %v174_v24 = vmin.f32 %v156_v14, %v173_v23 }
 0x436   :  { %v162_v17 = vcvt.s32.f32 %v160_v16  ;;  %v161_v21 = vcvt.s32.f32 %v159_v19  ;;  %v175_v25 = vrot.slane %v174_v24, 2 }
 0x438   :  { %163 = vmin.xlane.f32.xlu1 %v162_v17  ;;  %v176_v26 = vmin.f32 %v174_v24, %v175_v25 }
 0x43a   :  { %v177_v27 = vrot.slane %v176_v26, 1 }
 0x43c   :  { %v178_v28 = vmin.f32 %v176_v26, %v177_v27 }
 0x43e   :  { %vm180_vm12 = vcmp.le.f32.partialorder %v156_v14, %v178_v28  ;;  %vm179_vm15 = vcmp.lt.f32.partialorder %v178_v28, inf }
 0x43f   :  { %v181_v29 = vsel %vm180_vm12, %v661_v18, 8 }
 0x440   :  { %v182_v30 = vrot.slane %v181_v29, 4 }
 0x442   :  { %vm183_vm5 = vcmp.lt.s32.totalorder %v181_v29, %v182_v30 }
 0x443   :  { %v184_v31 = vsel %vm183_vm5, %v181_v29, %v182_v30 }
 0x444   :  { %v185_v32 = vrot.slane %v184_v31, 2 }
 0x446   :  { %vm186_vm7 = vcmp.lt.s32.totalorder %v184_v31, %v185_v32 }
 0x447   :  { %v187_v33 = vsel %vm186_vm7, %v184_v31, %v185_v32 }
 0x448   :  { %v188_v34 = vrot.slane %v187_v33, 1 }
 0x44a   :  { %vm189_vm8 = vcmp.lt.s32.totalorder %v187_v33, %v188_v34 }
 0x44b   :  { %v699_v38 = vsel %vm189_vm8, %v187_v33, %v188_v34 }
 0x44c   :  { %vm191_vm9 = vcmp.eq.s32.totalorder %v661_v18, %v699_v38  ;;  %vm202_vm14 = vcmp.eq.s32.totalorder %v656_v3, %v699_v38 }
 0x44d   :  { %vm708_vm1 = vmand %vm202_vm14, %vm179_vm15 }
 0x4c5   :  { %v164_v20 = vpop.xlane.xlu1 %163 }
 0x4c6   :  { %vm165_vm11 = vcmp.eq.f32.partialorder %v162_v17, %v164_v20  ;;  %v170_v35 = vcvt.f32.s32 %v164_v20 }
 0x4c7   :  { %v166_v22 = vsel %vm165_vm11, %v161_v21, inf }
 0x4c8   :  { %167 = vmin.xlane.f32.xlu0 %v166_v22  ;;  %v171_v37 = vshll.u32 %v170_v35, 16 }
 0x555   :  { %v168_v36 = vpop.xlane.xlu0 %167 }
 0x556   :  { %v169_v39 = vcvt.f32.s32 %v168_v36 }
 0x558   :  { %v172_v40 = vadd.s32 %v171_v37, %v169_v39 }
 0x55a   :  { %v192_v41 = vsel %vm191_vm9, %v172_v40, 128 }
 0x55b   :  { %v193_v42 = vrot.slane %v192_v41, 4 }
 0x55d   :  { %vm194_vm10 = vcmp.lt.s32.totalorder %v192_v41, %v193_v42 }
 0x55e   :  { %v195_v43 = vsel %vm194_vm10, %v192_v41, %v193_v42 }
 0x55f   :  { %v196_v44 = vrot.slane %v195_v43, 2 }
 0x561   :  { %vm197_vm13 = vcmp.lt.s32.totalorder %v195_v43, %v196_v44 }
 0x562   :  { %v198_v45 = vsel %vm197_vm13, %v195_v43, %v196_v44 }
 0x563   :  { %v199_v46 = vrot.slane %v198_v45, 1 }
 0x565   :  { %vm200_vm0 = vcmp.lt.s32.totalorder %v198_v45, %v199_v46 }
 0x566   :  { %v201_v47 = vsel %vm200_vm0, %v198_v45, %v199_v46 }
 0x567   :  { %vm207_vm2 = vcmp.eq.s32.totalorder %v656_v3, %v201_v47  ;;  %v206_v49 = vsel %vm708_vm1, %v201_v47, %v690_v10 }
 0x568   :  { %vm214_vm3 = vmor %vm191_vm9, %vm207_vm2 }
 0x569   :  { %vm215_vm4 = vmand %vm214_vm3, %vm179_vm15 }
 0x56a   :  { %v216_v50 = vsel %vm215_vm4, inf, %v154_v12  ;;  %vm719_vm6 = vmand %vm207_vm2, %vm179_vm15 }
 0x56b   :  { %217 = vmin.xlane.f32.xlu1 %v216_v50  ;;  %v209_v52 = vsel %vm719_vm6, %v699_v38, %v695_v13 }
 0x5f8   :  { %v218_v53 = vpop.xlane.xlu1 %217 }
 0x5f9   :  { %vm219_vm11 = vcmp.le.f32.partialorder %v216_v50, %v218_v53  ;;  %v235_v61 = vrot.slane %v218_v53, 4 }
 0x5fa   :  { %v220_v54 = vsel %vm219_vm11, %v656_v3, 128 }
 0x5fb   :  { %v222_v55 = vshra.s32 %v220_v54, 16  ;;  %v221_v57 = vand.u32 65535, %v220_v54  ;;  %v236_v62 = vmin.f32 %v218_v53, %v235_v61 }
 0x5fd   :  { %v224_v56 = vcvt.s32.f32 %v222_v55  ;;  %v223_v59 = vcvt.s32.f32 %v221_v57  ;;  %v237_v63 = vrot.slane %v236_v62, 2 }
 0x5ff   :  { %225 = vmin.xlane.f32.xlu0 %v224_v56  ;;  %v238_v0 = vmin.f32 %v236_v62, %v237_v63 }
 0x601   :  { %v239_v1 = vrot.slane %v238_v0, 1 }
 0x603   :  { %v240_v2 = vmin.f32 %v238_v0, %v239_v1 }
 0x605   :  { %vm242_vm5 = vcmp.le.f32.partialorder %v218_v53, %v240_v2  ;;  %vm241_vm0 = vcmp.lt.f32.partialorder %v240_v2, inf }
 0x606   :  { %v243_v4 = vsel %vm242_vm5, %v661_v18, 8 }
 0x607   :  { %v244_v5 = vrot.slane %v243_v4, 4 }
 0x609   :  { %vm245_vm7 = vcmp.lt.s32.totalorder %v243_v4, %v244_v5 }
 0x60a   :  { %v246_v6 = vsel %vm245_vm7, %v243_v4, %v244_v5 }
 0x60b   :  { %v247_v7 = vrot.slane %v246_v6, 2 }
 0x60d   :  { %vm248_vm8 = vcmp.lt.s32.totalorder %v246_v6, %v247_v7 }
 0x60e   :  { %v249_v8 = vsel %vm248_vm8, %v246_v6, %v247_v7 }
 0x60f   :  { %v250_v9 = vrot.slane %v249_v8, 1 }
 0x611   :  { %vm251_vm9 = vcmp.lt.s32.totalorder %v249_v8, %v250_v9 }
 0x612   :  { %v252_v13 = vsel %vm251_vm9, %v249_v8, %v250_v9 }
 0x613   :  { %vm253_vm10 = vcmp.eq.s32.totalorder %v661_v18, %v252_v13  ;;  %vm264_vm15 = vcmp.eq.s32.totalorder %v656_v3, %v252_v13 }
 0x614   :  { %vm267_vm2 = vmand %vm264_vm15, %vm241_vm0 }
 0x68c   :  { %v226_v58 = vpop.xlane.xlu0 %225 }
 0x68d   :  { %vm227_vm12 = vcmp.eq.f32.partialorder %v224_v56, %v226_v58  ;;  %v232_v10 = vcvt.f32.s32 %v226_v58 }
 0x68e   :  { %v228_v60 = vsel %vm227_vm12, %v223_v59, inf }
 0x68f   :  { %229 = vmin.xlane.f32.xlu1 %v228_v60  ;;  %v233_v12 = vshll.u32 %v232_v10, 16 }
 0x71c   :  { %v230_v11 = vpop.xlane.xlu1 %229 }
 0x71d   :  { %v231_v14 = vcvt.f32.s32 %v230_v11 }
 0x71f   :  { %v234_v15 = vadd.s32 %v233_v12, %v231_v14 }
 0x721   :  { %v254_v16 = vsel %vm253_vm10, %v234_v15, 128 }
 0x722   :  { %v255_v17 = vrot.slane %v254_v16, 4 }
 0x724   :  { %vm256_vm13 = vcmp.lt.s32.totalorder %v254_v16, %v255_v17 }
 0x725   :  { %v257_v19 = vsel %vm256_vm13, %v254_v16, %v255_v17 }
 0x726   :  { %v258_v20 = vrot.slane %v257_v19, 2 }
 0x728   :  { %vm259_vm14 = vcmp.lt.s32.totalorder %v257_v19, %v258_v20 }
 0x729   :  { %v260_v21 = vsel %vm259_vm14, %v257_v19, %v258_v20 }
 0x72a   :  { %v261_v22 = vrot.slane %v260_v21, 1 }
 0x72c   :  { %vm262_vm1 = vcmp.lt.s32.totalorder %v260_v21, %v261_v22 }
 0x72d   :  { %v263_v23 = vsel %vm262_vm1, %v260_v21, %v261_v22 }
 0x72e   :  { %vm269_vm3 = vcmp.eq.s32.totalorder %v656_v3, %v263_v23  ;;  %v734_v24 = vsel %vm267_vm2, %v263_v23, %v206_v49 }
 0x72f   :  { %vm276_vm4 = vmor %vm253_vm10, %vm269_vm3 }
 0x730   :  { %vm277_vm6 = vmand %vm276_vm4, %vm241_vm0 }
 0x731   :  { %v278_v25 = vsel %vm277_vm6, inf, %v216_v50  ;;  %vm270_vm11 = vmand %vm269_vm3, %vm241_vm0 }
 0x732   :  { %279 = vmin.xlane.f32.xlu0 %v278_v25  ;;  %v738_v26 = vsel %vm270_vm11, %v252_v13, %v209_v52 }
 0x7bf   :  { %v280_v27 = vpop.xlane.xlu0 %279 }
 0x7c0   :  { %vm281_vm12 = vcmp.le.f32.partialorder %v278_v25, %v280_v27  ;;  %v297_v35 = vrot.slane %v280_v27, 4 }
 0x7c1   :  { %v282_v28 = vsel %vm281_vm12, %v656_v3, 128 }
 0x7c2   :  { %v284_v29 = vshra.s32 %v282_v28, 16  ;;  %v283_v31 = vand.u32 65535, %v282_v28  ;;  %v298_v36 = vmin.f32 %v280_v27, %v297_v35 }
 0x7c4   :  { %v286_v30 = vcvt.s32.f32 %v284_v29  ;;  %v285_v33 = vcvt.s32.f32 %v283_v31  ;;  %v299_v37 = vrot.slane %v298_v36, 2 }
 0x7c6   :  { %287 = vmin.xlane.f32.xlu1 %v286_v30  ;;  %v300_v38 = vmin.f32 %v298_v36, %v299_v37 }
 0x7c8   :  { %v301_v39 = vrot.slane %v300_v38, 1 }
 0x7ca   :  { %v302_v40 = vmin.f32 %v300_v38, %v301_v39 }
 0x7cc   :  { %vm304_vm7 = vcmp.le.f32.partialorder %v280_v27, %v302_v40  ;;  %vm303_vm1 = vcmp.lt.f32.partialorder %v302_v40, inf }
 0x7cd   :  { %v305_v41 = vsel %vm304_vm7, %v661_v18, 8 }
 0x7ce   :  { %v306_v42 = vrot.slane %v305_v41, 4 }
 0x7d0   :  { %vm307_vm8 = vcmp.lt.s32.totalorder %v305_v41, %v306_v42 }
 0x7d1   :  { %v308_v43 = vsel %vm307_vm8, %v305_v41, %v306_v42 }
 0x7d2   :  { %v309_v44 = vrot.slane %v308_v43, 2 }
 0x7d4   :  { %vm310_vm9 = vcmp.lt.s32.totalorder %v308_v43, %v309_v44 }
 0x7d5   :  { %v311_v45 = vsel %vm310_vm9, %v308_v43, %v309_v44 }
 0x7d6   :  { %v312_v46 = vrot.slane %v311_v45, 1 }
 0x7d8   :  { %vm313_vm10 = vcmp.lt.s32.totalorder %v311_v45, %v312_v46 }
 0x7d9   :  { %v742_v50 = vsel %vm313_vm10, %v311_v45, %v312_v46 }
 0x7da   :  { %vm315_vm13 = vcmp.eq.s32.totalorder %v661_v18, %v742_v50  ;;  %vm326_vm0 = vcmp.eq.s32.totalorder %v656_v3, %v742_v50 }
 0x7db   :  { %vm751_vm3 = vmand %vm326_vm0, %vm303_vm1 }
 0x853   :  { %v288_v32 = vpop.xlane.xlu1 %287 }
 0x854   :  { %vm289_vm5 = vcmp.eq.f32.partialorder %v286_v30, %v288_v32  ;;  %v294_v47 = vcvt.f32.s32 %v288_v32 }
 0x855   :  { %v290_v34 = vsel %vm289_vm5, %v285_v33, inf }
 0x856   :  { %291 = vmin.xlane.f32.xlu0 %v290_v34  ;;  %v295_v49 = vshll.u32 %v294_v47, 16 }
 0x8e3   :  { %v292_v48 = vpop.xlane.xlu0 %291 }
 0x8e4   :  { %v293_v51 = vcvt.f32.s32 %v292_v48 }
 0x8e6   :  { %v296_v52 = vadd.s32 %v295_v49, %v293_v51 }
 0x8e8   :  { %v316_v53 = vsel %vm315_vm13, %v296_v52, 128 }
 0x8e9   :  { %v317_v54 = vrot.slane %v316_v53, 4 }
 0x8eb   :  { %vm318_vm14 = vcmp.lt.s32.totalorder %v316_v53, %v317_v54 }
 0x8ec   :  { %v319_v55 = vsel %vm318_vm14, %v316_v53, %v317_v54 }
 0x8ed   :  { %v320_v56 = vrot.slane %v319_v55, 2 }
 0x8ef   :  { %vm321_vm15 = vcmp.lt.s32.totalorder %v319_v55, %v320_v56 }
 0x8f0   :  { %v322_v57 = vsel %vm321_vm15, %v319_v55, %v320_v56 }
 0x8f1   :  { %v323_v58 = vrot.slane %v322_v57, 1 }
 0x8f3   :  { %vm324_vm2 = vcmp.lt.s32.totalorder %v322_v57, %v323_v58 }
 0x8f4   :  { %v325_v59 = vsel %vm324_vm2, %v322_v57, %v323_v58 }
 0x8f5   :  { %vm331_vm4 = vcmp.eq.s32.totalorder %v656_v3, %v325_v59  ;;  %v330_v61 = vsel %vm751_vm3, %v325_v59, %v734_v24 }
 0x8f6   :  { %vm338_vm6 = vmor %vm315_vm13, %vm331_vm4 }
 0x8f7   :  { %vm339_vm11 = vmand %vm338_vm6, %vm303_vm1 }
 0x8f8   :  { %v340_v62 = vsel %vm339_vm11, inf, %v278_v25  ;;  %vm762_vm12 = vmand %vm331_vm4, %vm303_vm1 }
 0x8f9   :  { %341 = vmin.xlane.f32.xlu1 %v340_v62  ;;  %v333_v0 = vsel %vm762_vm12, %v742_v50, %v738_v26 }
 0x986   :  { %v342_v1 = vpop.xlane.xlu1 %341 }
 0x987   :  { %vm343_vm5 = vcmp.le.f32.partialorder %v340_v62, %v342_v1  ;;  %v359_v10 = vrot.slane %v342_v1, 4 }
 0x988   :  { %v344_v2 = vsel %vm343_vm5, %v656_v3, 128 }
 0x989   :  { %v346_v4 = vshra.s32 %v344_v2, 16  ;;  %v345_v6 = vand.u32 65535, %v344_v2  ;;  %v360_v11 = vmin.f32 %v342_v1, %v359_v10 }
 0x98b   :  { %v348_v5 = vcvt.s32.f32 %v346_v4  ;;  %v347_v8 = vcvt.s32.f32 %v345_v6  ;;  %v361_v12 = vrot.slane %v360_v11, 2 }
 0x98d   :  { %349 = vmin.xlane.f32.xlu0 %v348_v5  ;;  %v362_v13 = vmin.f32 %v360_v11, %v361_v12 }
 0x98f   :  { %v363_v14 = vrot.slane %v362_v13, 1 }
 0x991   :  { %v364_v15 = vmin.f32 %v362_v13, %v363_v14 }
 0x993   :  { %vm366_vm8 = vcmp.le.f32.partialorder %v342_v1, %v364_v15  ;;  %vm365_vm2 = vcmp.lt.f32.partialorder %v364_v15, inf }
 0x994   :  { %v367_v16 = vsel %vm366_vm8, %v661_v18, 8 }
 0x995   :  { %v368_v17 = vrot.slane %v367_v16, 4 }
 0x997   :  { %vm369_vm9 = vcmp.lt.s32.totalorder %v367_v16, %v368_v17 }
 0x998   :  { %v370_v19 = vsel %vm369_vm9, %v367_v16, %v368_v17 }
 0x999   :  { %v371_v20 = vrot.slane %v370_v19, 2 }
 0x99b   :  { %vm372_vm10 = vcmp.lt.s32.totalorder %v370_v19, %v371_v20 }
 0x99c   :  { %v373_v21 = vsel %vm372_vm10, %v370_v19, %v371_v20 }
 0x99d   :  { %v374_v22 = vrot.slane %v373_v21, 1 }
 0x99f   :  { %vm375_vm13 = vcmp.lt.s32.totalorder %v373_v21, %v374_v22 }
 0x9a0   :  { %v376_v26 = vsel %vm375_vm13, %v373_v21, %v374_v22 }
 0x9a1   :  { %vm377_vm14 = vcmp.eq.s32.totalorder %v661_v18, %v376_v26  ;;  %vm388_vm1 = vcmp.eq.s32.totalorder %v656_v3, %v376_v26 }
 0x9a2   :  { %vm391_vm4 = vmand %vm388_vm1, %vm365_vm2 }
 0xa1a   :  { %v350_v7 = vpop.xlane.xlu0 %349 }
 0xa1b   :  { %vm351_vm7 = vcmp.eq.f32.partialorder %v348_v5, %v350_v7  ;;  %v356_v23 = vcvt.f32.s32 %v350_v7 }
 0xa1c   :  { %v352_v9 = vsel %vm351_vm7, %v347_v8, inf }
 0xa1d   :  { %353 = vmin.xlane.f32.xlu1 %v352_v9  ;;  %v357_v25 = vshll.u32 %v356_v23, 16 }
 0xaaa   :  { %v354_v24 = vpop.xlane.xlu1 %353 }
 0xaab   :  { %v355_v27 = vcvt.f32.s32 %v354_v24 }
 0xaad   :  { %v358_v28 = vadd.s32 %v357_v25, %v355_v27 }
 0xaaf   :  { %v378_v29 = vsel %vm377_vm14, %v358_v28, 128 }
 0xab0   :  { %v379_v30 = vrot.slane %v378_v29, 4 }
 0xab2   :  { %vm380_vm15 = vcmp.lt.s32.totalorder %v378_v29, %v379_v30 }
 0xab3   :  { %v381_v31 = vsel %vm380_vm15, %v378_v29, %v379_v30 }
 0xab4   :  { %v382_v32 = vrot.slane %v381_v31, 2 }
 0xab6   :  { %vm383_vm0 = vcmp.lt.s32.totalorder %v381_v31, %v382_v32 }
 0xab7   :  { %v384_v33 = vsel %vm383_vm0, %v381_v31, %v382_v32 }
 0xab8   :  { %v385_v34 = vrot.slane %v384_v33, 1 }
 0xaba   :  { %vm386_vm3 = vcmp.lt.s32.totalorder %v384_v33, %v385_v34 }
 0xabb   :  { %v387_v35 = vsel %vm386_vm3, %v384_v33, %v385_v34 }
 0xabc   :  { %vm393_vm6 = vcmp.eq.s32.totalorder %v656_v3, %v387_v35  ;;  %v777_v36 = vsel %vm391_vm4, %v387_v35, %v330_v61 }
 0xabd   :  { %vm400_vm11 = vmor %vm377_vm14, %vm393_vm6 }
 0xabe   :  { %vm401_vm12 = vmand %vm400_vm11, %vm365_vm2 }
 0xabf   :  { %v402_v37 = vsel %vm401_vm12, inf, %v340_v62  ;;  %vm394_vm5 = vmand %vm393_vm6, %vm365_vm2 }
 0xac0   :  { %403 = vmin.xlane.f32.xlu0 %v402_v37  ;;  %v781_v38 = vsel %vm394_vm5, %v376_v26, %v333_v0 }
 0xb4d   :  { %v404_v39 = vpop.xlane.xlu0 %403 }
 0xb4e   :  { %vm405_vm7 = vcmp.le.f32.partialorder %v402_v37, %v404_v39  ;;  %v421_v47 = vrot.slane %v404_v39, 4 }
 0xb4f   :  { %v406_v40 = vsel %vm405_vm7, %v656_v3, 128 }
 0xb50   :  { %v408_v41 = vshra.s32 %v406_v40, 16  ;;  %v407_v43 = vand.u32 65535, %v406_v40  ;;  %v422_v48 = vmin.f32 %v404_v39, %v421_v47 }
 0xb52   :  { %v410_v42 = vcvt.s32.f32 %v408_v41  ;;  %v409_v45 = vcvt.s32.f32 %v407_v43  ;;  %v423_v49 = vrot.slane %v422_v48, 2 }
 0xb54   :  { %411 = vmin.xlane.f32.xlu1 %v410_v42  ;;  %v424_v50 = vmin.f32 %v422_v48, %v423_v49 }
 0xb56   :  { %v425_v51 = vrot.slane %v424_v50, 1 }
 0xb58   :  { %v426_v52 = vmin.f32 %v424_v50, %v425_v51 }
 0xb5a   :  { %vm428_vm9 = vcmp.le.f32.partialorder %v404_v39, %v426_v52  ;;  %vm427_vm3 = vcmp.lt.f32.partialorder %v426_v52, inf }
 0xb5b   :  { %v429_v53 = vsel %vm428_vm9, %v661_v18, 8 }
 0xb5c   :  { %v430_v54 = vrot.slane %v429_v53, 4 }
 0xb5e   :  { %vm431_vm10 = vcmp.lt.s32.totalorder %v429_v53, %v430_v54 }
 0xb5f   :  { %v432_v55 = vsel %vm431_vm10, %v429_v53, %v430_v54 }
 0xb60   :  { %v433_v56 = vrot.slane %v432_v55, 2 }
 0xb62   :  { %vm434_vm13 = vcmp.lt.s32.totalorder %v432_v55, %v433_v56 }
 0xb63   :  { %v435_v57 = vsel %vm434_vm13, %v432_v55, %v433_v56 }
 0xb64   :  { %v436_v58 = vrot.slane %v435_v57, 1 }
 0xb66   :  { %vm437_vm14 = vcmp.lt.s32.totalorder %v435_v57, %v436_v58 }
 0xb67   :  { %v785_v63 = vsel %vm437_vm14, %v435_v57, %v436_v58 }
 0xb68   :  { %vm439_vm15 = vcmp.eq.s32.totalorder %v661_v18, %v785_v63  ;;  %vm450_vm2 = vcmp.eq.s32.totalorder %v656_v3, %v785_v63 }
 0xb69   :  { %vm796_vm6 = vmand %vm450_vm2, %vm427_vm3 }
 0xbe1   :  { %v412_v44 = vpop.xlane.xlu1 %411 }
 0xbe2   :  { %vm413_vm8 = vcmp.eq.f32.partialorder %v410_v42, %v412_v44  ;;  %v418_v59 = vcvt.f32.s32 %v412_v44 }
 0xbe3   :  { %v414_v46 = vsel %vm413_vm8, %v409_v45, inf }
 0xbe4   :  { %415 = vmin.xlane.f32.xlu0 %v414_v46  ;;  %v419_v61 = vshll.u32 %v418_v59, 16 }
 0xc71   :  { %v416_v60 = vpop.xlane.xlu0 %415 }
 0xc72   :  { %v417_v62 = vcvt.f32.s32 %v416_v60 }
 0xc74   :  { %v420_v0 = vadd.s32 %v419_v61, %v417_v62 }
 0xc76   :  { %v440_v1 = vsel %vm439_vm15, %v420_v0, 128 }
 0xc77   :  { %v441_v2 = vrot.slane %v440_v1, 4 }
 0xc79   :  { %vm442_vm0 = vcmp.lt.s32.totalorder %v440_v1, %v441_v2 }
 0xc7a   :  { %v443_v4 = vsel %vm442_vm0, %v440_v1, %v441_v2 }
 0xc7b   :  { %v444_v5 = vrot.slane %v443_v4, 2 }
 0xc7d   :  { %vm445_vm1 = vcmp.lt.s32.totalorder %v443_v4, %v444_v5 }
 0xc7e   :  { %v446_v6 = vsel %vm445_vm1, %v443_v4, %v444_v5 }
 0xc7f   :  { %v447_v7 = vrot.slane %v446_v6, 1 }
 0xc81   :  { %vm448_vm4 = vcmp.lt.s32.totalorder %v446_v6, %v447_v7 }
 0xc82   :  { %v794_v8 = vsel %vm448_vm4, %v446_v6, %v447_v7 }
 0xc83   :  { %vm455_vm11 = vcmp.eq.s32.totalorder %v656_v3, %v794_v8  ;;  %v454_v10 = vsel %vm796_vm6, %v794_v8, %v777_v36 }
 0xc84   :  { %vm462_vm12 = vmor %vm439_vm15, %vm455_vm11 }
 0xc85   :  { %vm463_vm5 = vmand %vm462_vm12, %vm427_vm3 }
 0xc86   :  { %v464_v11 = vsel %vm463_vm5, inf, %v402_v37  ;;  %vm809_vm7 = vmand %vm455_vm11, %vm427_vm3 }
 0xc87   :  { %465 = vmin.xlane.f32.xlu1 %v464_v11  ;;  %v457_v13 = vsel %vm809_vm7, %v785_v63, %v781_v38 }
 0xd14   :  { %v466_v14 = vpop.xlane.xlu1 %465 }
 0xd15   :  { %vm467_vm8 = vcmp.le.f32.partialorder %v464_v11, %v466_v14  ;;  %v483_v23 = vrot.slane %v466_v14, 4 }
 0xd16   :  { %v468_v15 = vsel %vm467_vm8, %v656_v3, 128 }
 0xd17   :  { %v470_v16 = vshra.s32 %v468_v15, 16  ;;  %v469_v19 = vand.u32 65535, %v468_v15  ;;  %v484_v24 = vmin.f32 %v466_v14, %v483_v23 }
 0xd19   :  { %v472_v17 = vcvt.s32.f32 %v470_v16  ;;  %v471_v21 = vcvt.s32.f32 %v469_v19  ;;  %v485_v25 = vrot.slane %v484_v24, 2 }
 0xd1b   :  { %473 = vmin.xlane.f32.xlu0 %v472_v17  ;;  %v486_v26 = vmin.f32 %v484_v24, %v485_v25 }
 0xd1d   :  { %v487_v27 = vrot.slane %v486_v26, 1 }
 0xd1f   :  { %v488_v28 = vmin.f32 %v486_v26, %v487_v27 }
 0xd21   :  { %vm490_vm10 = vcmp.le.f32.partialorder %v466_v14, %v488_v28  ;;  %vm489_vm4 = vcmp.lt.f32.partialorder %v488_v28, inf }
 0xd22   :  { %v491_v29 = vsel %vm490_vm10, %v661_v18, 8 }
 0xd23   :  { %v492_v30 = vrot.slane %v491_v29, 4 }
 0xd25   :  { %vm493_vm13 = vcmp.lt.s32.totalorder %v491_v29, %v492_v30 }
 0xd26   :  { %v494_v31 = vsel %vm493_vm13, %v491_v29, %v492_v30 }
 0xd27   :  { %v495_v32 = vrot.slane %v494_v31, 2 }
 0xd29   :  { %vm496_vm14 = vcmp.lt.s32.totalorder %v494_v31, %v495_v32 }
 0xd2a   :  { %v497_v33 = vsel %vm496_vm14, %v494_v31, %v495_v32 }
 0xd2b   :  { %v498_v34 = vrot.slane %v497_v33, 1 }
 0xd2d   :  { %vm499_vm15 = vcmp.lt.s32.totalorder %v497_v33, %v498_v34 }
 0xd2e   :  { %v500_v39 = vsel %vm499_vm15, %v497_v33, %v498_v34 }
 0xd2f   :  { %vm501_vm0 = vcmp.eq.s32.totalorder %v661_v18, %v500_v39  ;;  %vm512_vm3 = vcmp.eq.s32.totalorder %v656_v3, %v500_v39 }
 0xd30   :  { %vm515_vm11 = vmand %vm512_vm3, %vm489_vm4 }
 0xda8   :  { %v474_v20 = vpop.xlane.xlu0 %473 }
 0xda9   :  { %vm475_vm9 = vcmp.eq.f32.partialorder %v472_v17, %v474_v20  ;;  %v480_v35 = vcvt.f32.s32 %v474_v20 }
 0xdaa   :  { %v476_v22 = vsel %vm475_vm9, %v471_v21, inf }
 0xdab   :  { %477 = vmin.xlane.f32.xlu1 %v476_v22  ;;  %v481_v37 = vshll.u32 %v480_v35, 16 }
 0xe38   :  { %v478_v36 = vpop.xlane.xlu1 %477 }
 0xe39   :  { %v479_v40 = vcvt.f32.s32 %v478_v36 }
 0xe3b   :  { %v482_v41 = vadd.s32 %v481_v37, %v479_v40 }
 0xe3d   :  { %v502_v42 = vsel %vm501_vm0, %v482_v41, 128 }
 0xe3e   :  { %v503_v43 = vrot.slane %v502_v42, 4 }
 0xe40   :  { %vm504_vm1 = vcmp.lt.s32.totalorder %v502_v42, %v503_v43 }
 0xe41   :  { %v505_v44 = vsel %vm504_vm1, %v502_v42, %v503_v43 }
 0xe42   :  { %v506_v45 = vrot.slane %v505_v44, 2 }
 0xe44   :  { %vm507_vm2 = vcmp.lt.s32.totalorder %v505_v44, %v506_v45 }
 0xe45   :  { %v508_v46 = vsel %vm507_vm2, %v505_v44, %v506_v45 }
 0xe46   :  { %v509_v47 = vrot.slane %v508_v46, 1 }
 0xe48   :  { %vm510_vm6 = vcmp.lt.s32.totalorder %v508_v46, %v509_v47 }
 0xe49   :  { %v511_v48 = vsel %vm510_vm6, %v508_v46, %v509_v47 }
 0xe4a   :  { %v516_v18 = vsel %vm515_vm11, %v511_v48, %v454_v10  ;;  %vm517_vm12 = vcmp.eq.s32.totalorder %v656_v3, %v511_v48 }
 0xe4b   :  { %520 = vst [vmem:[#allocation5] sm:$0x1] %v516_v18  ;;  %vm822_vm5 = vmand %vm517_vm12, %vm489_vm4 }
 0xe4c   :  { %587 = shalt.err (!%p584_p12)
}
 0xe4d   :  { %s588_s28 = scalar_lea.hbm %s866_s1, 16 }
 0xe4e   :  { %p589_p13 = scmp.ne.s32.totalorder %s866_s1, %s588_s28  ;;  %p592_p0 = scmp.lt.u32.totalorder %s588_s28, %s866_s1 }
 0xe50   :  { %p594_p1 = pnand %p592_p0, %p589_p13 }
 0xe52   :  { %597 = shalt.err (!%p594_p1)
}
 0xe53   :  { %531 = dma.vmem_to_hbm [thread:$0]  %s529_s21, 16, %s866_s1, [#allocation4]   ;;  %v519_v3 = vsel %vm822_vm5, %v500_v39, %v457_v13 }
 0xe54   :  { %521 = vst [vmem:[#allocation6] sm:$0x1] %v519_v3  ;;  %s598_s7 = scalar_lea.vmem %s826_s23, 16  ;;  %s602_s8 = scalar_lea.vmem %s826_s23, 32 }
 0xe55   :  { %p599_p2 = scmp.ne.s32.totalorder %s826_s23, %s598_s7  ;;  %p603_p3 = scmp.lt.s32.totalorder %s826_s23, %s826_s23 }
 0xe56   :  { %p604_p4 = scmp.lt.s32.totalorder %s602_s8, %s598_s7 }
 0xe58   :  { %p605_p5 = por %p604_p4, %p603_p3 }
 0xe5a   :  { %p606_p6 = pnand %p605_p5, %p599_p2 }
 0xe5c   :  { %609 = shalt.err (!%p606_p6)
}
 0xe5d   :  { %s610_s10 = scalar_lea.hbm %s867_s2, 16 }
 0xe5e   :  { %p611_p7 = scmp.ne.s32.totalorder %s867_s2, %s610_s10  ;;  %p614_p8 = scmp.lt.u32.totalorder %s610_s10, %s867_s2 }
 0xe60   :  { %p616_p9 = pnand %p614_p8, %p611_p7 }
 0xe62   :  { %619 = shalt.err (!%p616_p9)
}
 0xe63   :  { %541 = dma.vmem_to_hbm [thread:$0]  %s826_s23, 16, %s867_s2, [#allocation7]  }
 0xe64   :  { %622 = dma.done.wait [#allocation4], 16  }
 0xe65   :  { %623 = vsyncadd [#allocation4], 4294967280 }
 0xe66   :  { %624 = dma.done.wait [#allocation7], 16  }
 0xe67   :  { %625 = vsyncadd [#allocation7], 4294967280 }
 0xe68   :  { %548 = vsyncpa [#allocation3], 1 }
 0xe69   :  { %549 = vsyncpa [#allocation4], 1 }
 0xe6a   :  { %550 = vsyncpa [#allocation7], 1 }

</bundles_post_ra>
